<compile_context>
chip_gen: v7x
topology: tpu7x:2x2x1
jax: 0.10.0
libtpu: 0.0.40
codegen_flags: <defaults>
</compile_context>

<pallas_src>
import functools
import math

import jax
import jax.numpy as jnp
import numpy as np
from jax import lax
from jax.experimental import pallas as pl
from jax.experimental.pallas import tpu as pltpu


def _round_up(x, m):
    return ((x + m - 1) // m) * m


def _attention_kernel(lens_ref,      # (BB, 1)   int32  valid lengths
                      enc_ref,       # (BB, T, E) bf16  encoder states (zero padded)
                      dec_h_ref,     # (BB, A)   f32    dec @ W_dec + b_dec + b_enc
                      w_enc_ref,     # (E, A)    bf16
                      w_attn_ref,    # (1, A)    f32    mlp_attn weight as a row
                      ctx_ref,       # (BB, E)   f32    un-projected context out
                      attn_ref,      # (BB, T)   f32    attention weights out
                      *, scaling):
    BB, T, E = enc_ref.shape
    A = w_enc_ref.shape[1]

    enc = enc_ref[...]                                           # (BB, T, E) bf16

    # Encoder projection: one big (BB*T, E) @ (E, A) MXU matmul, bf16 in / f32 acc.
    enc_h = jnp.dot(enc.reshape(BB * T, E), w_enc_ref[...],
                    preferred_element_type=jnp.float32)          # (BB*T, A) f32
    enc_h = enc_h.reshape(BB, T, A)

    # Add the (pre-folded) decoder projection + both biases, broadcast over time.
    t = jnp.tanh(enc_h + dec_h_ref[...][:, None, :])             # (BB, T, A) f32

    # Attention score: VPU multiply + lane reduction over A (avoids an N=1 matmul).
    score = jnp.sum(t * w_attn_ref[...], axis=-1)                # (BB, T), T on lanes

    # Length mask, then sharpening scale (PyTorch order: mask -> scale -> softmax).
    # NOTE: matches the reference; scaling == 0 would give NaN (-inf * 0) there too.
    lens = lens_ref[...]                                         # (BB, 1) int32
    tpos = lax.broadcasted_iota(jnp.int32, (BB, T), 1)
    score = jnp.where(tpos < lens, score, -jnp.inf)
    score = score * scaling

    # Softmax over the lane (time) axis; division via EUP reciprocal.
    m = jnp.max(score, axis=-1, keepdims=True)
    e = jnp.exp(score - m)
    denom = jnp.sum(e, axis=-1, keepdims=True)
    attn = e * pl.reciprocal(denom, approx=True)                 # (BB, T) f32

    # Context: VPU broadcast-multiply + sublane reduce over T
    # (replaces BB separate (1,T)@(T,E) MXU matmuls; masked / padded t contribute 0).
    ctx = jnp.sum(attn[:, :, None] * enc, axis=1)                # (BB, E) f32

    attn_ref[...] = attn
    ctx_ref[...] = ctx.astype(ctx_ref.dtype)


def content_based_attention(enc_states, enc_len, dec_states, params,
                            scaling=1.0, block_b=32):
    """enc_states: [B, T, E] f32, enc_len: [B] int, dec_states: [B, D] f32."""
    B, T, E = enc_states.shape
    A = params["w_enc"].shape[1]

    # ---- hoisted projections (single batched XLA matmuls) -------------------
    # mlp_dec, with both Linear biases folded into one additive term.
    dec_h = (dec_states @ params["w_dec"]
             + params["b_dec"] + params["b_enc"]).astype(jnp.float32)   # (B, A)

    # ---- pad to TPU-friendly tiles ------------------------------------------
    T_c = _round_up(T, 16)        # sublane-aligned only (bf16 packs 16 rows / vreg)
    E_pad = _round_up(E, 128)     # lane-dense enc slab / ctx output, full MXU K
    A_pad = _round_up(A, 128)     # lane-dense attention-feature axis, full MXU N

    # ---- choose batch rows per grid step under an explicit VMEM budget ------
    def vmem_est(bb):
        enc_tile = bb * T_c * E_pad * 2            # bf16 enc slab (double-buffered)
        temps = 2 * bb * T_c * A_pad * 4           # enc_h + tanh intermediates (f32)
        ctx_tmp = bb * T_c * E_pad * 4             # promoted enc for the ctx reduce
        outs = bb * E_pad * 4 + bb * T_c * 4
        weights = E_pad * A_pad * 2 + A_pad * 4
        return 2 * enc_tile + temps + ctx_tmp + 2 * outs + weights

    BB = max(8, _round_up(min(block_b, max(B, 1)), 8))
    budget = 32 * 1024 * 1024                      # conservative for v7x (64 MiB VMEM)
    while BB > 8 and vmem_est(BB) > budget:
        BB -= 8
    B_pad = _round_up(B, BB)
    # keep >= 2 grid steps when possible so both v7x TensorCores get work
    if B_pad // BB < 2 and B_pad > 8:
        BB = max(8, _round_up(B_pad // 2, 8))
        B_pad = _round_up(B, BB)

    enc_p = jnp.pad(enc_states.astype(jnp.bfloat16),
                    ((0, B_pad - B), (0, T_c - T), (0, E_pad - E)))
    dec_h_p = jnp.pad(dec_h, ((0, B_pad - B), (0, A_pad - A)))
    lens_p = jnp.pad(enc_len.astype(jnp.int32).reshape(B, 1),
                     ((0, B_pad - B), (0, 0)),
                     constant_values=1)            # padded rows stay NaN-free
    w_enc_p = jnp.pad(params["w_enc"].astype(jnp.bfloat16),
                      ((0, E_pad - E), (0, A_pad - A)))
    w_attn_p = jnp.pad(params["w_attn"].reshape(1, A).astype(jnp.float32),
                       ((0, 0), (0, A_pad - A)))

    grid = (B_pad // BB,)

    def _run(use_buffered_hint):
        if use_buffered_hint:
            # constant index_map -> single-buffer the resident weights (saves VMEM)
            w_enc_spec = pl.BlockSpec((E_pad, A_pad), lambda i: (0, 0),
                                      pipeline_mode=pl.Buffered(1))
            w_attn_spec = pl.BlockSpec((1, A_pad), lambda i: (0, 0),
                                       pipeline_mode=pl.Buffered(1))
        else:
            w_enc_spec = pl.BlockSpec((E_pad, A_pad), lambda i: (0, 0))
            w_attn_spec = pl.BlockSpec((1, A_pad), lambda i: (0, 0))

        return pl.pallas_call(
            functools.partial(_attention_kernel, scaling=float(scaling)),
            grid=grid,
            in_specs=[
                pl.BlockSpec((BB, 1), lambda i: (i, 0)),            # lens
                pl.BlockSpec((BB, T_c, E_pad), lambda i: (i, 0, 0)),  # enc slab (bf16)
                pl.BlockSpec((BB, A_pad), lambda i: (i, 0)),        # dec_h (pre-folded)
                w_enc_spec,                                          # W_enc (resident)
                w_attn_spec,                                         # mlp_attn row
            ],
            out_specs=[
                pl.BlockSpec((BB, E_pad), lambda i: (i, 0)),        # ctx (pre-mlp_out)
                pl.BlockSpec((BB, T_c), lambda i: (i, 0)),          # attn
            ],
            out_shape=(
                jax.ShapeDtypeStruct((B_pad, E_pad), jnp.float32),
                jax.ShapeDtypeStruct((B_pad, T_c), jnp.float32),
            ),
            compiler_params=pltpu.CompilerParams(
                dimension_semantics=("parallel",),
                vmem_limit_bytes=48 * 1024 * 1024),
        )(lens_p, enc_p, dec_h_p, w_enc_p, w_attn_p)

    try:
        ctx_p, attn_p = _run(True)
    except Exception:   # fallback if this jax build rejects pipeline_mode=Buffered(1)
        ctx_p, attn_p = _run(False)

    # ---- hoisted output projection (batched XLA matmul) ---------------------
    ctx = ctx_p[:B, :E] @ params["w_out"] + params["b_out"]          # (B, O)
    attn = attn_p[:B, :T]                                            # (B, T)
    return ctx, attn


def reference(enc_states, enc_len, dec_states, params, scaling=1.0):
    """Pure-JAX f32 reference matching the PyTorch forward."""
    enc_h = enc_states @ params["w_enc"] + params["b_enc"]            # (B, T, A)
    dec_h = dec_states @ params["w_dec"] + params["b_dec"]            # (B, A)
    attn = (jnp.tanh(enc_h + dec_h[:, None, :]) @ params["w_attn"])[..., 0]  # (B, T)
    mask = jnp.arange(enc_states.shape[1])[None, :] < enc_len[:, None]
    attn = jnp.where(mask, attn, -jnp.inf)
    attn = jax.nn.softmax(attn * scaling, axis=-1)
    ctx = jnp.einsum("bt,bte->be", attn, enc_states)
    ctx = ctx @ params["w_out"] + params["b_out"]
    return ctx, attn


def init_params(key, enc_dim, dec_dim, attn_dim, output_dim):
    """Deterministic Linear-style init (uniform +/- 1/sqrt(fan_in))."""
    ks = jax.random.split(key, 7)

    def unif(k, shape, fan_in):
        b = 1.0 / math.sqrt(fan_in)
        return jax.random.uniform(k, shape, jnp.float32, -b, b)

    return {
        # stored pre-transposed: (in_dim, out_dim)
        "w_enc": unif(ks[0], (enc_dim, attn_dim), enc_dim),
        "b_enc": unif(ks[1], (1, attn_dim), enc_dim),
        "w_dec": unif(ks[2], (dec_dim, attn_dim), dec_dim),
        "b_dec": unif(ks[3], (1, attn_dim), dec_dim),
        "w_attn": unif(ks[4], (attn_dim, 1), attn_dim),   # mlp_attn has no bias
        "w_out": unif(ks[5], (enc_dim, output_dim), enc_dim),
        "b_out": unif(ks[6], (1, output_dim), enc_dim),
    }


if __name__ == "__main__":
    B, T = 4, 10
    enc_dim, dec_dim, attn_dim, output_dim = 20, 25, 30, 5
    scaling = 1.0

    key = jax.random.PRNGKey(0)
    k_enc, k_dec, k_par = jax.random.split(key, 3)

    enc_states = jax.random.normal(k_enc, (B, T, enc_dim), jnp.float32)
    dec_states = jax.random.normal(k_dec, (B, dec_dim), jnp.float32)
    enc_len = jnp.array([10, 7, 3, 10], dtype=jnp.int32)

    params = init_params(k_par, enc_dim, dec_dim, attn_dim, output_dim)

    ctx, attn = content_based_attention(enc_states, enc_len, dec_states, params, scaling)
    jax.block_until_ready((ctx, attn))

    ctx_ref, attn_ref = reference(enc_states, enc_len, dec_states, params, scaling)
    # bf16-streamed operands (per perf review) -> looser tolerance vs the f32 reference.
    np.testing.assert_allclose(np.asarray(ctx), np.asarray(ctx_ref), atol=3e-2, rtol=3e-2)
    np.testing.assert_allclose(np.asarray(attn), np.asarray(attn_ref), atol=2e-2, rtol=2e-2)

    assert ctx.shape == (B, output_dim) and attn.shape == (B, T)
    print("KERNEL_OK")
</pallas_src>

<mosaic_0001>
module attributes {stable_mosaic.version = 11 : i64} {
  func.func @_attention_kernel(%arg0: i32, %arg1: memref<8x1xi32, #tpu.memory_space<vmem>>, %arg2: memref<8x16x128xbf16, #tpu.memory_space<vmem>>, %arg3: memref<8x128xf32, #tpu.memory_space<vmem>>, %arg4: memref<128x128xbf16, #tpu.memory_space<vmem>>, %arg5: memref<1x128xf32, #tpu.memory_space<vmem>>, %arg6: memref<8x128xf32, #tpu.memory_space<vmem>>, %arg7: memref<8x16xf32, #tpu.memory_space<vmem>>) attributes {dimension_semantics = [#tpu.dimension_semantics<parallel>], iteration_bounds = array<i64: 1>, scalar_prefetch = 0 : i64, scratch_operands = 0 : i64, tpu.core_type = #tpu.core_type<tc>, window_params = [{transform_indices = @transform_0, window_bounds = array<i64: 8, 1>}, {transform_indices = @transform_1, window_bounds = array<i64: 8, 16, 128>}, {transform_indices = @transform_2, window_bounds = array<i64: 8, 128>}, {pipeline_mode = #tpu.pipeline_mode<synchronous>, transform_indices = @transform_3, window_bounds = array<i64: 128, 128>}, {pipeline_mode = #tpu.pipeline_mode<synchronous>, transform_indices = @transform_4, window_bounds = array<i64: 1, 128>}, {transform_indices = @transform_5, window_bounds = array<i64: 8, 128>}, {transform_indices = @transform_6, window_bounds = array<i64: 8, 16>}]} {
    %c0 = arith.constant 0 : index
    %c0_0 = arith.constant 0 : index
    %c0_1 = arith.constant 0 : index
    %0 = vector.load %arg2[%c0, %c0_0, %c0_1] : memref<8x16x128xbf16, #tpu.memory_space<vmem>>, vector<8x16x128xbf16>
    %1 = vector.shape_cast %0 : vector<8x16x128xbf16> to vector<128x128xbf16>
    %c0_2 = arith.constant 0 : index
    %c0_3 = arith.constant 0 : index
    %2 = vector.load %arg4[%c0_2, %c0_3] : memref<128x128xbf16, #tpu.memory_space<vmem>>, vector<128x128xbf16>
    %cst = arith.constant dense<0.000000e+00> : vector<128x128xf32>
    %3 = tpu.matmul %1, %2, %cst {dimension_numbers = #tpu.dot_dimension_numbers<[1], [0], [0], [1], [0, 0, 1, 1], [], []>} : vector<128x128xbf16>, vector<128x128xbf16>, vector<128x128xf32> -> vector<128x128xf32>
    %4 = vector.shape_cast %3 : vector<128x128xf32> to vector<8x16x128xf32>
    %c0_4 = arith.constant 0 : index
    %c0_5 = arith.constant 0 : index
    %5 = vector.load %arg3[%c0_4, %c0_5] : memref<8x128xf32, #tpu.memory_space<vmem>>, vector<8x128xf32>
    %6 = vector.shape_cast %5 : vector<8x128xf32> to vector<8x1x128xf32>
    %7 = vector.broadcast %6 : vector<8x1x128xf32> to vector<8x16x128xf32>
    %8 = arith.addf %4, %7 : vector<8x16x128xf32>
    %9 = math.tanh %8 : vector<8x16x128xf32>
    %c0_6 = arith.constant 0 : index
    %c0_7 = arith.constant 0 : index
    %10 = vector.load %arg5[%c0_6, %c0_7] : memref<1x128xf32, #tpu.memory_space<vmem>>, vector<1x128xf32>
    %11 = vector.shape_cast %10 : vector<1x128xf32> to vector<1x1x128xf32>
    %12 = vector.broadcast %11 : vector<1x1x128xf32> to vector<8x16x128xf32>
    %13 = arith.mulf %9, %12 : vector<8x16x128xf32>
    %cst_8 = arith.constant dense<0.000000e+00> : vector<8x16xf32>
    %14 = vector.multi_reduction <add>, %13, %cst_8 [2] : vector<8x16x128xf32> to vector<8x16xf32>
    %c0_9 = arith.constant 0 : index
    %c0_10 = arith.constant 0 : index
    %15 = vector.load %arg1[%c0_9, %c0_10] : memref<8x1xi32, #tpu.memory_space<vmem>>, vector<8x1xi32>
    %16 = tpu.iota {dimensions = array<i32: 1>} : vector<8x16xi32>
    %17 = vector.broadcast %15 : vector<8x1xi32> to vector<8x16xi32>
    %18 = arith.cmpi slt, %16, %17 : vector<8x16xi32>
    %cst_11 = arith.constant 0xFF800000 : f32
    %19 = vector.broadcast %cst_11 : f32 to vector<8x16xf32>
    %20 = arith.select %18, %14, %19 : vector<8x16xi1>, vector<8x16xf32>
    %cst_12 = arith.constant 1.000000e+00 : f32
    %21 = vector.broadcast %cst_12 : f32 to vector<8x16xf32>
    %22 = arith.mulf %20, %21 : vector<8x16xf32>
    %cst_13 = arith.constant dense<0xFF800000> : vector<8xf32>
    %23 = vector.multi_reduction <maximumf>, %22, %cst_13 [1] : vector<8x16xf32> to vector<8xf32>
    %24 = vector.shape_cast %23 : vector<8xf32> to vector<8x1xf32>
    %25 = vector.broadcast %24 : vector<8x1xf32> to vector<8x16xf32>
    %26 = arith.subf %22, %25 : vector<8x16xf32>
    %27 = math.exp %26 : vector<8x16xf32>
    %cst_14 = arith.constant dense<0.000000e+00> : vector<8xf32>
    %28 = vector.multi_reduction <add>, %27, %cst_14 [1] : vector<8x16xf32> to vector<8xf32>
    %29 = vector.shape_cast %28 : vector<8xf32> to vector<8x1xf32>
    %30 = tpu.reciprocal %29 {approx = true} : vector<8x1xf32> -> vector<8x1xf32>
    %31 = vector.broadcast %30 : vector<8x1xf32> to vector<8x16xf32>
    %32 = arith.mulf %27, %31 : vector<8x16xf32>
    %33 = vector.shape_cast %32 : vector<8x16xf32> to vector<8x16x1xf32>
    %34 = arith.extf %0 : vector<8x16x128xbf16> to vector<8x16x128xf32>
    %35 = vector.broadcast %33 : vector<8x16x1xf32> to vector<8x16x128xf32>
    %36 = arith.mulf %35, %34 : vector<8x16x128xf32>
    %cst_15 = arith.constant dense<0.000000e+00> : vector<8x128xf32>
    %37 = vector.multi_reduction <add>, %36, %cst_15 [1] : vector<8x16x128xf32> to vector<8x128xf32>
    %c0_16 = arith.constant 0 : index
    %c0_17 = arith.constant 0 : index
    %38 = vector.load %arg7[%c0_16, %c0_17] : memref<8x16xf32, #tpu.memory_space<vmem>>, vector<8x16xf32>
    tpu.vector_store %arg7[%c0_16, %c0_17], %32 {strides = array<i32>} : memref<8x16xf32, #tpu.memory_space<vmem>>, vector<8x16xf32>,
    %c0_18 = arith.constant 0 : index
    %c0_19 = arith.constant 0 : index
    %39 = vector.load %arg6[%c0_18, %c0_19] : memref<8x128xf32, #tpu.memory_space<vmem>>, vector<8x128xf32>
    tpu.vector_store %arg6[%c0_18, %c0_19], %37 {strides = array<i32>} : memref<8x128xf32, #tpu.memory_space<vmem>>, vector<8x128xf32>,
    return
  }
  func.func @transform_0(%arg0: i32) -> (i32, i32) {
    %c0_i32 = arith.constant 0 : i32
    %c0_i32_0 = arith.constant 0 : i32
    return %arg0, %c0_i32 : i32, i32
  }
  func.func @transform_1(%arg0: i32) -> (i32, i32, i32) {
    %c0_i32 = arith.constant 0 : i32
    %c0_i32_0 = arith.constant 0 : i32
    %c0_i32_1 = arith.constant 0 : i32
    return %arg0, %c0_i32, %c0_i32_0 : i32, i32, i32
  }
  func.func @transform_2(%arg0: i32) -> (i32, i32) {
    %c0_i32 = arith.constant 0 : i32
    %c0_i32_0 = arith.constant 0 : i32
    return %arg0, %c0_i32 : i32, i32
  }
  func.func @transform_3(%arg0: i32) -> (i32, i32) {
    %c0_i32 = arith.constant 0 : i32
    %c0_i32_0 = arith.constant 0 : i32
    %c0_i32_1 = arith.constant 0 : i32
    return %c0_i32, %c0_i32_0 : i32, i32
  }
  func.func @transform_4(%arg0: i32) -> (i32, i32) {
    %c0_i32 = arith.constant 0 : i32
    %c0_i32_0 = arith.constant 0 : i32
    %c0_i32_1 = arith.constant 0 : i32
    return %c0_i32, %c0_i32_0 : i32, i32
  }
  func.func @transform_5(%arg0: i32) -> (i32, i32) {
    %c0_i32 = arith.constant 0 : i32
    %c0_i32_0 = arith.constant 0 : i32
    return %arg0, %c0_i32 : i32, i32
  }
  func.func @transform_6(%arg0: i32) -> (i32, i32) {
    %c0_i32 = arith.constant 0 : i32
    %c0_i32_0 = arith.constant 0 : i32
    return %arg0, %c0_i32 : i32, i32
  }
}

module attributes {stable_mosaic.version = 11 : i64} {
  func.func @_attention_kernel(%arg0: i32, %arg1: memref<8x1xi32, #tpu.memory_space<vmem>>, %arg2: memref<8x16x128xbf16, #tpu.memory_space<vmem>>, %arg3: memref<8x128xf32, #tpu.memory_space<vmem>>, %arg4: memref<128x128xbf16, #tpu.memory_space<vmem>>, %arg5: memref<1x128xf32, #tpu.memory_space<vmem>>, %arg6: memref<8x128xf32, #tpu.memory_space<vmem>>, %arg7: memref<8x16xf32, #tpu.memory_space<vmem>>) attributes {dimension_semantics = [#tpu.dimension_semantics<parallel>], iteration_bounds = array<i64: 1>, scalar_prefetch = 0 : i64, scratch_operands = 0 : i64, tpu.core_type = #tpu.core_type<tc>, window_params = [{transform_indices = @transform_0, window_bounds = array<i64: 8, 1>}, {transform_indices = @transform_1, window_bounds = array<i64: 8, 16, 128>}, {transform_indices = @transform_2, window_bounds = array<i64: 8, 128>}, {pipeline_mode = #tpu.pipeline_mode<synchronous>, transform_indices = @transform_3, window_bounds = array<i64: 128, 128>}, {pipeline_mode = #tpu.pipeline_mode<synchronous>, transform_indices = @transform_4, window_bounds = array<i64: 1, 128>}, {transform_indices = @transform_5, window_bounds = array<i64: 8, 128>}, {transform_indices = @transform_6, window_bounds = array<i64: 8, 16>}]} {
    %c0 = arith.constant 0 : index
    %c0_0 = arith.constant 0 : index
    %c0_1 = arith.constant 0 : index
    %0 = vector.load %arg2[%c0, %c0_0, %c0_1] : memref<8x16x128xbf16, #tpu.memory_space<vmem>>, vector<8x16x128xbf16>
    %1 = vector.shape_cast %0 : vector<8x16x128xbf16> to vector<128x128xbf16>
    %c0_2 = arith.constant 0 : index
    %c0_3 = arith.constant 0 : index
    %2 = vector.load %arg4[%c0_2, %c0_3] : memref<128x128xbf16, #tpu.memory_space<vmem>>, vector<128x128xbf16>
    %cst = arith.constant dense<0.000000e+00> : vector<128x128xf32>
    %3 = tpu.matmul %1, %2, %cst {dimension_numbers = #tpu.dot_dimension_numbers<[1], [0], [0], [1], [0, 0, 1, 1], [], []>} : vector<128x128xbf16>, vector<128x128xbf16>, vector<128x128xf32> -> vector<128x128xf32>
    %4 = vector.shape_cast %3 : vector<128x128xf32> to vector<8x16x128xf32>
    %c0_4 = arith.constant 0 : index
    %c0_5 = arith.constant 0 : index
    %5 = vector.load %arg3[%c0_4, %c0_5] : memref<8x128xf32, #tpu.memory_space<vmem>>, vector<8x128xf32>
    %6 = vector.shape_cast %5 : vector<8x128xf32> to vector<8x1x128xf32>
    %7 = vector.broadcast %6 : vector<8x1x128xf32> to vector<8x16x128xf32>
    %8 = arith.addf %4, %7 : vector<8x16x128xf32>
    %9 = math.tanh %8 : vector<8x16x128xf32>
    %c0_6 = arith.constant 0 : index
    %c0_7 = arith.constant 0 : index
    %10 = vector.load %arg5[%c0_6, %c0_7] : memref<1x128xf32, #tpu.memory_space<vmem>>, vector<1x128xf32>
    %11 = vector.shape_cast %10 : vector<1x128xf32> to vector<1x1x128xf32>
    %12 = vector.broadcast %11 : vector<1x1x128xf32> to vector<8x16x128xf32>
    %13 = arith.mulf %9, %12 : vector<8x16x128xf32>
    %cst_8 = arith.constant dense<0.000000e+00> : vector<8x16xf32>
    %14 = vector.multi_reduction <add>, %13, %cst_8 [2] : vector<8x16x128xf32> to vector<8x16xf32>
    %c0_9 = arith.constant 0 : index
    %c0_10 = arith.constant 0 : index
    %15 = vector.load %arg1[%c0_9, %c0_10] : memref<8x1xi32, #tpu.memory_space<vmem>>, vector<8x1xi32>
    %16 = tpu.iota {dimensions = array<i32: 1>} : vector<8x16xi32>
    %17 = vector.broadcast %15 : vector<8x1xi32> to vector<8x16xi32>
    %18 = arith.cmpi slt, %16, %17 : vector<8x16xi32>
    %cst_11 = arith.constant 0xFF800000 : f32
    %19 = vector.broadcast %cst_11 : f32 to vector<8x16xf32>
    %20 = arith.select %18, %14, %19 : vector<8x16xi1>, vector<8x16xf32>
    %cst_12 = arith.constant 1.000000e+00 : f32
    %21 = vector.broadcast %cst_12 : f32 to vector<8x16xf32>
    %22 = arith.mulf %20, %21 : vector<8x16xf32>
    %cst_13 = arith.constant dense<0xFF800000> : vector<8xf32>
    %23 = vector.multi_reduction <maximumf>, %22, %cst_13 [1] : vector<8x16xf32> to vector<8xf32>
    %24 = vector.shape_cast %23 : vector<8xf32> to vector<8x1xf32>
    %25 = vector.broadcast %24 : vector<8x1xf32> to vector<8x16xf32>
    %26 = arith.subf %22, %25 : vector<8x16xf32>
    %27 = math.exp %26 : vector<8x16xf32>
    %cst_14 = arith.constant dense<0.000000e+00> : vector<8xf32>
    %28 = vector.multi_reduction <add>, %27, %cst_14 [1] : vector<8x16xf32> to vector<8xf32>
    %29 = vector.shape_cast %28 : vector<8xf32> to vector<8x1xf32>
    %30 = tpu.reciprocal %29 {approx = true} : vector<8x1xf32> -> vector<8x1xf32>
    %31 = vector.broadcast %30 : vector<8x1xf32> to vector<8x16xf32>
    %32 = arith.mulf %27, %31 : vector<8x16xf32>
    %33 = vector.shape_cast %32 : vector<8x16xf32> to vector<8x16x1xf32>
    %34 = arith.extf %0 : vector<8x16x128xbf16> to vector<8x16x128xf32>
    %35 = vector.broadcast %33 : vector<8x16x1xf32> to vector<8x16x128xf32>
    %36 = arith.mulf %35, %34 : vector<8x16x128xf32>
    %cst_15 = arith.constant dense<0.000000e+00> : vector<8x128xf32>
    %37 = vector.multi_reduction <add>, %36, %cst_15 [1] : vector<8x16x128xf32> to vector<8x128xf32>
    %c0_16 = arith.constant 0 : index
    %c0_17 = arith.constant 0 : index
    %38 = vector.load %arg7[%c0_16, %c0_17] : memref<8x16xf32, #tpu.memory_space<vmem>>, vector<8x16xf32>
    tpu.vector_store %arg7[%c0_16, %c0_17], %32 {strides = array<i32>} : memref<8x16xf32, #tpu.memory_space<vmem>>, vector<8x16xf32>,
    %c0_18 = arith.constant 0 : index
    %c0_19 = arith.constant 0 : index
    %39 = vector.load %arg6[%c0_18, %c0_19] : memref<8x128xf32, #tpu.memory_space<vmem>>, vector<8x128xf32>
    tpu.vector_store %arg6[%c0_18, %c0_19], %37 {strides = array<i32>} : memref<8x128xf32, #tpu.memory_space<vmem>>, vector<8x128xf32>,
    return
  }
  func.func @transform_0(%arg0: i32) -> (i32, i32) {
    %c0_i32 = arith.constant 0 : i32
    %c0_i32_0 = arith.constant 0 : i32
    return %arg0, %c0_i32 : i32, i32
  }
  func.func @transform_1(%arg0: i32) -> (i32, i32, i32) {
    %c0_i32 = arith.constant 0 : i32
    %c0_i32_0 = arith.constant 0 : i32
    %c0_i32_1 = arith.constant 0 : i32
    return %arg0, %c0_i32, %c0_i32_0 : i32, i32, i32
  }
  func.func @transform_2(%arg0: i32) -> (i32, i32) {
    %c0_i32 = arith.constant 0 : i32
    %c0_i32_0 = arith.constant 0 : i32
    return %arg0, %c0_i32 : i32, i32
  }
  func.func @transform_3(%arg0: i32) -> (i32, i32) {
    %c0_i32 = arith.constant 0 : i32
    %c0_i32_0 = arith.constant 0 : i32
    %c0_i32_1 = arith.constant 0 : i32
    return %c0_i32, %c0_i32_0 : i32, i32
  }
  func.func @transform_4(%arg0: i32) -> (i32, i32) {
    %c0_i32 = arith.constant 0 : i32
    %c0_i32_0 = arith.constant 0 : i32
    %c0_i32_1 = arith.constant 0 : i32
    return %c0_i32, %c0_i32_0 : i32, i32
  }
  func.func @transform_5(%arg0: i32) -> (i32, i32) {
    %c0_i32 = arith.constant 0 : i32
    %c0_i32_0 = arith.constant 0 : i32
    return %arg0, %c0_i32 : i32, i32
  }
  func.func @transform_6(%arg0: i32) -> (i32, i32) {
    %c0_i32 = arith.constant 0 : i32
    %c0_i32_0 = arith.constant 0 : i32
    return %arg0, %c0_i32 : i32, i32
  }
}

</mosaic_0001>

<bundles_post_ra>
// kernel: tpu_custom_call.1
= control target key start
LH: loop header
LB: loop body
LE: loop exit
PB: predicated region body
PF: predicated region fallthrough
CT: control target
= control target key end

     0   :  { %12 = vsyncpa [#allocation3], 0  ;;  %s1261_s0 = inlined_call_operand.vmem [shape: s32[8,1], index: 0, kind: input, shape index: {}]   ;;  %s1262_s1 = inlined_call_operand.hbm [shape: bf16[8,16,128], index: 1, kind: input, shape index: {}]   ;;  %s1263_s2 = inlined_call_operand.vmem [shape: f32[8,128], index: 2, kind: input, shape index: {}]   ;;  %s1264_s3 = inlined_call_operand.hbm [shape: bf16[128,128], index: 3, kind: input, shape index: {}]   ;;  %s1265_s4 = inlined_call_operand.vmem [shape: f32[1,128], index: 4, kind: input, shape index: {}]   ;;  %s1266_s5 = inlined_call_operand.hbm [shape: f32[8,128], index: 5, kind: output, shape index: {0}]   ;;  %s1267_s6 = inlined_call_operand.hbm [shape: f32[8,16], index: 6, kind: output, shape index: {1}]  }
   0x1   :  { %13 = vsyncpa [#allocation6], 0 }
   0x2   :  { %14 = vsyncpa [#allocation4], 0 }
   0x3   :  { %15 = vsyncpa [#allocation9], 0  ;;  %s1052_s21 = smov [#allocation2]   ;;  %s956_s25 = scalar_lea.hbm %s1262_s1, 1024 }
   0x4   :  { %s23_s22 = sshll.u32 %s1052_s21, 4  ;;  %p957_p0 = scmp.ne.s32.totalorder %s1262_s1, %s956_s25  ;;  %s24_s22 = int_to_ptr.vmem [resolvable:$true] %s23_s22 }
   0x5   :  { %p960_p1 = scmp.lt.u32.totalorder %s956_s25, %s1262_s1 }
   0x7   :  { %p962_p2 = pnand %p960_p1, %p957_p0 }
   0x9   :  { %965 = shalt.err (!%p962_p2)
}
   0xa   :  { %s966_s30 = scalar_lea.vmem %s24_s22, 1024  ;;  %p971_p4 = scmp.lt.s32.totalorder %s24_s22, %s24_s22 }
   0xb   :  { %p967_p3 = scmp.ne.s32.totalorder %s24_s22, %s966_s30  ;;  %p972_p5 = scmp.lt.s32.totalorder %s966_s30, %s966_s30 }
   0xd   :  { %p973_p6 = por %p972_p5, %p971_p4 }
   0xf   :  { %p974_p7 = pnand %p973_p6, %p967_p3 }
  0x11   :  { %977 = shalt.err (!%p974_p7)
}
  0x12   :  { %s1053_s7 = smov 64   ;;  %s1054_s8 = smov 4  }
  0x13   :  { %29 = dma.hbm_to_vmem [thread:$0]  %s1262_s1, 1024, %s24_s22, [#allocation3], %s1053_s7, %s1053_s7, %s1054_s8  }
  0x14   :  { %s1055_s11 = smov [#allocation5]   ;;  %s978_s15 = scalar_lea.hbm %s1264_s3, 1024 }
  0x15   :  { %s37_s12 = sshll.u32 %s1055_s11, 4  ;;  %p979_p8 = scmp.ne.s32.totalorder %s1264_s3, %s978_s15  ;;  %s38_s12 = int_to_ptr.vmem [resolvable:$true] %s37_s12 }
  0x16   :  { %p982_p9 = scmp.lt.u32.totalorder %s978_s15, %s1264_s3 }
  0x18   :  { %p984_p10 = pnand %p982_p9, %p979_p8 }
  0x1a   :  { %987 = shalt.err (!%p984_p10)
}
  0x1b   :  { %s988_s20 = scalar_lea.vmem %s38_s12, 1024  ;;  %p993_p12 = scmp.lt.s32.totalorder %s38_s12, %s38_s12 }
  0x1c   :  { %p989_p11 = scmp.ne.s32.totalorder %s38_s12, %s988_s20  ;;  %p994_p13 = scmp.lt.s32.totalorder %s988_s20, %s988_s20 }
  0x1e   :  { %p995_p0 = por %p994_p13, %p993_p12 }
  0x20   :  { %p996_p1 = pnand %p995_p0, %p989_p11 }
  0x22   :  { %999 = shalt.err (!%p996_p1)
}
  0x23   :  { %43 = dma.hbm_to_vmem [thread:$0]  %s1264_s3, 1024, %s38_s12, [#allocation6], %s1053_s7, %s1053_s7, %s1054_s8  }
  0x24   :  { %1044 = dma.done.wait [#allocation3], 1024  }
  0x25   :  { %1045 = vsyncadd [#allocation3], 4294966272 }
  0x26   :  { %1046 = dma.done.wait [#allocation6], 1024  }
  0x27   :  { %1047 = vsyncadd [#allocation6], 4294966272  ;;  %v895_v0 = vld [vmem:[#allocation5] sm:$0xff]   ;;  %v896_v1 = vld [vmem:[#allocation5 + $0x8] sm:$0xff]   ;;  %v1056_v16 = vmov 0   ;;  %v284_v19 = vlaneseq  ;;  %vm488_vm0 = vcmask 130112  }
  0x28   :  { %838 = vmatprep.subr.bf16.mxu0 %v895_v0  ;;  %870 = vmatprep.subr.bf16.mxu1 %v895_v0  ;;  %v897_v2 = vld [vmem:[#allocation5 + $0x10] sm:$0xff]   ;;  %v898_v3 = vld [vmem:[#allocation5 + $0x18] sm:$0xff]   ;;  %v1119_v4 = vld [vmem:[#allocation2] sm:$0xff]   ;;  %v1057_v17 = vmov 1966171168   ;;  %vm553_vm1 = vcmask 1041409  }
  0x29   :  { %839 = vmatpush3.bf16.msra.mxu0 %v895_v0  ;;  %878 = vmatpush3.bf16.msra.mxu1 %v895_v0  ;;  %v1121_v5 = vld [vmem:[#allocation2 + $0x20] sm:$0xff]   ;;  %v900_v7 = vld [vmem:[#allocation5 + $0x28] sm:$0xff]   ;;  %v901_v8 = vld [vmem:[#allocation5 + $0x30] sm:$0xff]   ;;  %v282_v18 = vunpack.c.l.s4 %v1057_v17  ;;  %v1144_v21 = vshrl.u32 %v284_v19, 7  ;;  %vm555_vm2 = vcmask 1042434   ;;  %vm557_vm3 = vcmask 1043459  }
  0x2a   :  { %840 = vmatprep.subr.bf16.mxu0 %v896_v1  ;;  %871 = vmatprep.subr.bf16.mxu1 %v896_v1  ;;  %v899_v6 = vld [vmem:[#allocation5 + $0x20] sm:$0xff]   ;;  %v902_v9 = vld [vmem:[#allocation5 + $0x38] sm:$0xff]   ;;  %v1125_v10 = vld [vmem:[#allocation2 + $0x8] sm:$0xff]   ;;  %vm559_vm4 = vcmask 1044484   ;;  %vm561_vm5 = vcmask 1045509   ;;  %vm563_vm6 = vcmask 1046534  }
  0x2b   :  { %854 = vmatprep.mubr.bf16.mxu0 %v1119_v4  ;;  %862 = vmatprep.mubr.bf16.mxu1 %v1121_v5  ;;  %v1127_v11 = vld [vmem:[#allocation2 + $0x28] sm:$0xff]   ;;  %v1129_v12 = vld [vmem:[#allocation2 + $0x10] sm:$0xff]   ;;  %v1136_v14 = vld [vmem:[#allocation2 + $0x18] sm:$0xff]   ;;  %v283_v20 = vunpack.c.0.s8 %v282_v18  ;;  %v1151_v30 = vsub.s32 0, %v1144_v21  ;;  %vm565_vm7 = vcmask 1047559   ;;  %vm569_vm8 = vcmask 130048  }
  0x2c   :  { %v1131_v13 = vld [vmem:[#allocation2 + $0x30] sm:$0xff]   ;;  %v1139_v15 = vld [vmem:[#allocation2 + $0x38] sm:$0xff]   ;;  %894 = vset.pattern.permute.xlu0 %v1056_v16 }
  0x2d   :  { %841 = vmatpush3.bf16.msra.mxu0 %v896_v1  ;;  %879 = vmatpush3.bf16.msra.mxu1 %v896_v1  ;;  %v278_v22 = vld [vmem:[%s1263_s2] sm:$0xff]  ;;  %v286_v23 = vsub.s32 %v283_v20, %v1144_v21 }
  0x2e   :  { %842 = vmatprep.subr.bf16.mxu0 %v897_v2  ;;  %872 = vmatprep.subr.bf16.mxu1 %v897_v2  ;;  %v280_v24 = vcombine.high %v278_v22, %v278_v22  ;;  %v1161_v1 = vld [vmem:[%s1265_s4] ss:$0 sm:$0xff] }
  0x2f   :  { %v287_v25 = vrot.slane %v278_v22, %v286_v23 }
  0x30   :  { %v294_v26 = vrot.slane %v280_v24, %v286_v23 }
  0x31   :  { %843 = vmatpush3.bf16.msra.mxu0 %v897_v2  ;;  %880 = vmatpush3.bf16.msra.mxu1 %v897_v2  ;;  %v295_v27 = vcombine.high %v287_v25, %v287_v25  ;;  %v303_v32 = vrot.slane %v287_v25, %v286_v23 }
  0x32   :  { %844 = vmatprep.subr.bf16.mxu0 %v898_v3  ;;  %873 = vmatprep.subr.bf16.mxu1 %v898_v3  ;;  %v296_v28 = vcombine.high %v294_v26, %v294_v26  ;;  %v310_v36 = vrot.slane %v294_v26, %v286_v23 }
  0x33   :  { %v317_v29 = vrot.slane %v295_v27, %v286_v23  ;;  %v332_v35 = vrot.slane %v303_v32, %v1151_v30  ;;  %v325_v59 = vcombine.high %v303_v32, %v303_v32 }
  0x34   :  { %v324_v31 = vrot.slane %v296_v28, %v286_v23  ;;  %v348_v44 = vrot.slane %v310_v36, %v1151_v30  ;;  %v326_v16 = vcombine.high %v310_v36, %v310_v36 }
  0x35   :  { %845 = vmatpush3.bf16.msra.mxu0 %v898_v3  ;;  %881 = vmatpush3.bf16.msra.mxu1 %v898_v3  ;;  %v336_v33 = vrot.slane %v317_v29, %v1151_v30  ;;  %v327_v50 = vcombine.high %v317_v29, %v317_v29 }
  0x36   :  { %846 = vmatprep.subr.bf16.mxu0 %v899_v6  ;;  %874 = vmatprep.subr.bf16.mxu1 %v899_v6  ;;  %v352_v34 = vrot.slane %v324_v31, %v1151_v30  ;;  %v328_v56 = vcombine.high %v324_v31, %v324_v31  ;;  %v356_v26 = vrot.slane %v326_v16, %v1151_v30 }
  0x37   :  { %v344_v53 = vrot.slane %v327_v50, %v1151_v30 }
  0x39   :  { %847 = vmatpush3.bf16.msra.mxu0 %v899_v6  ;;  %882 = vmatpush3.bf16.msra.mxu1 %v899_v6 }
  0x3a   :  { %848 = vmatprep.subr.bf16.mxu0 %v900_v7  ;;  %875 = vmatprep.subr.bf16.mxu1 %v900_v7 }
  0x3d   :  { %849 = vmatpush3.bf16.msra.mxu0 %v900_v7  ;;  %883 = vmatpush3.bf16.msra.mxu1 %v900_v7  ;;  %v360_v7 = vrot.slane %v328_v56, %v1151_v30 }
  0x3e   :  { %850 = vmatprep.subr.bf16.mxu0 %v901_v8  ;;  %876 = vmatprep.subr.bf16.mxu1 %v901_v8 }
  0x41   :  { %851 = vmatpush3.bf16.msra.mxu0 %v901_v8  ;;  %884 = vmatpush3.bf16.msra.mxu1 %v901_v8 }
  0x42   :  { %852 = vmatprep.subr.bf16.mxu0 %v902_v9  ;;  %877 = vmatprep.subr.bf16.mxu1 %v902_v9 }
  0x45   :  { %853 = vmatpush3.bf16.msra.mxu0 %v902_v9  ;;  %885 = vmatpush3.bf16.msra.mxu1 %v902_v9  ;;  %v340_v9 = vrot.slane %v325_v59, %v1151_v30 }
  0x48   :  { %855 = vmatmul.mubr.bf16.vlgmr.msra.gmra.mrb[0].mxu0 %v1125_v10  ;;  %863 = vmatmul.mubr.bf16.vlgmr.msra.gmra.mrb[0].mxu1 %v1127_v11 }
  0x49   :  { %858 = vmatprep.mubr.bf16.mxu0 %v1129_v12  ;;  %866 = vmatprep.mubr.bf16.mxu1 %v1131_v13 }
  0x50   :  { %859 = vmatmul.mubr.bf16.gmra.mrb[4].mxu0 %v1136_v14  ;;  %867 = vmatmul.mubr.bf16.gmra.mrb[4].mxu1 %v1139_v15 }
 0x11b   :  { %v856_v37 = vpop.f32.mrb[0].mxu0  ;;  %v864_v38 = vpop.f32.mrb[0].mxu1 }
 0x11c   :  { %v371_v39 = vadd.f32 %v856_v37, %v336_v33  ;;  %v379_v40 = vadd.f32 %v864_v38, %v352_v34  ;;  %v215_v41 = vpop.f32.mrb[1].mxu0  ;;  %v247_v42 = vpop.f32.mrb[1].mxu1 }
 0x11d   :  { %v369_v43 = vadd.f32 %v332_v35, %v215_v41  ;;  %v857_v45 = vpop.f32.mrb[2].mxu0  ;;  %v865_v46 = vpop.f32.mrb[2].mxu1  ;;  %v377_v52 = vadd.f32 %v348_v44, %v247_v42 }
 0x11e   :  { %920 = vtanh.f32 %v371_v39  ;;  %v372_v47 = vadd.f32 %v857_v45, %v336_v33  ;;  %v218_v48 = vpop.f32.mrb[3].mxu0  ;;  %v250_v49 = vpop.f32.mrb[3].mxu1  ;;  %v380_v51 = vadd.f32 %v865_v46, %v352_v34 }
 0x11f   :  { %922 = vtanh.f32 %v379_v40  ;;  %v378_v57 = vadd.f32 %v348_v44, %v250_v49  ;;  %v370_v61 = vadd.f32 %v332_v35, %v218_v48 }
 0x120   :  { %924 = vtanh.f32 %v369_v43 }
 0x121   :  { %926 = vtanh.f32 %v372_v47 }
 0x122   :  { %928 = vtanh.f32 %v380_v51 }
 0x123   :  { %v860_v54 = vpop.f32.mrb[4].mxu0  ;;  %v868_v55 = vpop.f32.mrb[4].mxu1  ;;  %930 = vtanh.f32 %v377_v52 }
 0x124   :  { %v231_v58 = vpop.f32.mrb[5].mxu0  ;;  %v263_v60 = vpop.f32.mrb[5].mxu1  ;;  %v375_v6 = vadd.f32 %v860_v54, %v344_v53  ;;  %932 = vtanh.f32 %v378_v57  ;;  %v383_v23 = vadd.f32 %v868_v55, %v360_v7 }
 0x125   :  { %v861_v62 = vpop.f32.mrb[6].mxu0  ;;  %v869_v63 = vpop.f32.mrb[6].mxu1  ;;  %934 = vtanh.f32 %v370_v61  ;;  %v373_v33 = vadd.f32 %v340_v9, %v231_v58  ;;  %v381_v41 = vadd.f32 %v356_v26, %v263_v60  ;;  %v456_v58 = vld [vmem:[%s1261_s0] sm:$0xff]  ;;  %s1058_s0 = smov [#allocation8]  }
 0x126   :  { %v376_v0 = vadd.f32 %v861_v62, %v344_v53  ;;  %v234_v2 = vpop.f32.mrb[7].mxu0  ;;  %v266_v3 = vpop.f32.mrb[7].mxu1  ;;  %v384_v39 = vadd.f32 %v869_v63, %v360_v7  ;;  %s791_s25 = sshll.u32 %s1058_s0, 4  ;;  %s792_s25 = int_to_ptr.vmem [resolvable:$true] %s791_s25 }
 0x127   :  { %v374_v25 = vadd.f32 %v340_v9, %v234_v2  ;;  %v382_v32 = vadd.f32 %v356_v26, %v266_v3  ;;  %v458_v3 = vand.u32 127, %v284_v19  ;;  %s1000_s26 = scalar_lea.vmem %s792_s25, 128  ;;  %p1005_p3 = scmp.lt.s32.totalorder %s792_s25, %s792_s25 }
 0x128   :  { %v921_v8 = vpop.eup %920  ;;  %936 = vtanh.f32 %v376_v0  ;;  %p1001_p2 = scmp.ne.s32.totalorder %s792_s25, %s1000_s26  ;;  %p1006_p4 = scmp.lt.s32.totalorder %s1000_s26, %s1000_s26 }
 0x129   :  { %v923_v17 = vpop.eup %922  ;;  %v410_v18 = vmul.f32 %v921_v8, %v1161_v1  ;;  %938 = vtanh.f32 %v375_v6  ;;  %v483_v7 = vadd.s32 4294967288, %v458_v3 }
 0x12a   :  { %v925_v20 = vpop.eup %924  ;;  %v418_v22 = vmul.f32 %v923_v17, %v1161_v1  ;;  %940 = vtanh.f32 %v383_v23  ;;  %v481_v17 = vsub.s32 %v458_v3, %v1144_v21  ;;  %p1007_p5 = por %p1006_p4, %p1005_p3 }
 0x12b   :  { %428 = vadd.xlane.f32.xlu1 %v410_v18  ;;  %v927_v24 = vpop.eup %926  ;;  %v408_v27 = vmul.f32 %v925_v20, %v1161_v1  ;;  %942 = vtanh.f32 %v374_v25  ;;  %v486_v9 = vsub.s32 %v483_v7, %v1144_v21 }
 0x12c   :  { %444 = vadd.xlane.f32.xlu0 %v418_v22  ;;  %v411_v28 = vmul.f32 %v927_v24, %v1161_v1  ;;  %v929_v29 = vpop.eup %928  ;;  %944 = vtanh.f32 %v382_v32  ;;  %p1008_p6 = pnand %p1007_p5, %p1001_p2 }
 0x12d   :  { %v931_v31 = vpop.eup %930  ;;  %v419_v34 = vmul.f32 %v929_v29, %v1161_v1  ;;  %946 = vtanh.f32 %v373_v33 }
 0x12e   :  { %v933_v35 = vpop.eup %932  ;;  %v416_v36 = vmul.f32 %v931_v31, %v1161_v1  ;;  %948 = vtanh.f32 %v384_v39 }
 0x12f   :  { %430 = vadd.xlane.f32.xlu1 %v411_v28  ;;  %v935_v37 = vpop.eup %934  ;;  %v417_v42 = vmul.f32 %v933_v35, %v1161_v1  ;;  %950 = vtanh.f32 %v381_v41 }
 0x130   :  { %424 = vadd.xlane.f32.xlu0 %v408_v27  ;;  %v409_v43 = vmul.f32 %v935_v37, %v1161_v1 }
 0x132   :  { %v937_v38 = vpop.eup %936 }
 0x133   :  { %446 = vadd.xlane.f32.xlu1 %v419_v34  ;;  %v939_v40 = vpop.eup %938  ;;  %v415_v44 = vmul.f32 %v937_v38, %v1161_v1 }
 0x134   :  { %440 = vadd.xlane.f32.xlu0 %v416_v36  ;;  %v414_v45 = vmul.f32 %v939_v40, %v1161_v1  ;;  %v941_v46 = vpop.eup %940 }
 0x135   :  { %v943_v47 = vpop.eup %942  ;;  %v422_v48 = vmul.f32 %v941_v46, %v1161_v1 }
 0x136   :  { %v413_v49 = vmul.f32 %v943_v47, %v1161_v1  ;;  %v945_v50 = vpop.eup %944 }
 0x137   :  { %442 = vadd.xlane.f32.xlu1 %v417_v42  ;;  %v947_v51 = vpop.eup %946  ;;  %v421_v52 = vmul.f32 %v945_v50, %v1161_v1 }
 0x138   :  { %426 = vadd.xlane.f32.xlu0 %v409_v43  ;;  %v949_v53 = vpop.eup %948  ;;  %v412_v54 = vmul.f32 %v947_v51, %v1161_v1 }
 0x139   :  { %v951_v55 = vpop.eup %950  ;;  %v423_v56 = vmul.f32 %v949_v53, %v1161_v1 }
 0x13a   :  { %v420_v57 = vmul.f32 %v951_v55, %v1161_v1 }
 0x13b   :  { %438 = vadd.xlane.f32.xlu1 %v415_v44 }
 0x13c   :  { %436 = vadd.xlane.f32.xlu0 %v414_v45 }
 0x13f   :  { %434 = vadd.xlane.f32.xlu1 %v413_v49 }
 0x140   :  { %452 = vadd.xlane.f32.xlu0 %v422_v48 }
 0x143   :  { %450 = vadd.xlane.f32.xlu1 %v421_v52 }
 0x144   :  { %432 = vadd.xlane.f32.xlu0 %v412_v54 }
 0x147   :  { %454 = vadd.xlane.f32.xlu1 %v423_v56 }
 0x148   :  { %448 = vadd.xlane.f32.xlu0 %v420_v57 }
 0x15e   :  { %460 = vperm.xlu0 %894, %v456_v58  }
 0x1b8   :  { %v429_v59 = vpop.xlane.xlu1 %428 }
 0x1b9   :  { %v445_v60 = vpop.xlane.xlu0 %444  ;;  %v493_v22 = vrot.slane %v429_v59, %v481_v17 }
 0x1ba   :  { %v529_v39 = vrot.slane %v445_v60, %v481_v17 }
 0x1bc   :  { %v431_v61 = vpop.xlane.xlu1 %430 }
 0x1bd   :  { %v425_v62 = vpop.xlane.xlu0 %424  ;;  %v497_v24 = vrot.slane %v431_v61, %v486_v9 }
 0x1be   :  { %v482_v23 = vrot.slane %v425_v62, %v481_v17 }
 0x1bf   :  { %v498_v33 = vsel %vm488_vm0, %v497_v24, %v493_v22  ;;  %v649_v22 = vsub.s32 6, %v1144_v21  ;;  %v605_v24 = vsub.s32 2, %v1144_v21 }
 0x1c0   :  { %v447_v63 = vpop.xlane.xlu1 %446 }
 0x1c1   :  { %v441_v0 = vpop.xlane.xlu0 %440  ;;  %v533_v34 = vrot.slane %v447_v63, %v486_v9 }
 0x1c2   :  { %v520_v35 = vrot.slane %v441_v0, %v481_v17 }
 0x1c3   :  { %v534_v47 = vsel %vm488_vm0, %v533_v34, %v529_v39 }
 0x1c4   :  { %v443_v2 = vpop.xlane.xlu1 %442 }
 0x1c5   :  { %v427_v6 = vpop.xlane.xlu0 %426  ;;  %v524_v29 = vrot.slane %v443_v2, %v486_v9  ;;  %v616_v2 = vsub.s32 3, %v1144_v21 }
 0x1c6   :  { %v487_v18 = vrot.slane %v427_v6, %v486_v9 }
 0x1c7   :  { %v525_v43 = vsel %vm488_vm0, %v524_v29, %v520_v35 }
 0x1c8   :  { %v439_v8 = vpop.xlane.xlu1 %438  ;;  %v489_v26 = vsel %vm488_vm0, %v487_v18, %v482_v23 }
 0x1c9   :  { %v437_v1 = vpop.xlane.xlu0 %436  ;;  %v515_v27 = vrot.slane %v439_v8, %v486_v9  ;;  %v554_v36 = vsel %vm553_vm1, %v498_v33, %v489_v26 }
 0x1ca   :  { %v511_v19 = vrot.slane %v437_v1, %v481_v17  ;;  %v627_v1 = vsub.s32 4, %v1144_v21 }
 0x1cc   :  { %v435_v16 = vpop.xlane.xlu1 %434  ;;  %v516_v40 = vsel %vm488_vm0, %v515_v27, %v511_v19 }
 0x1cd   :  { %v453_v20 = vpop.xlane.xlu0 %452  ;;  %v506_v31 = vrot.slane %v435_v16, %v486_v9  ;;  %v638_v16 = vsub.s32 5, %v1144_v21 }
 0x1ce   :  { %v547_v52 = vrot.slane %v453_v20, %v481_v17 }
 0x1d0   :  { %v451_v25 = vpop.xlane.xlu1 %450 }
 0x1d1   :  { %v433_v28 = vpop.xlane.xlu0 %432  ;;  %v542_v45 = vrot.slane %v451_v25, %v486_v9 }
 0x1d2   :  { %v502_v32 = vrot.slane %v433_v28, %v481_v17 }
 0x1d4   :  { %v507_v37 = vsel %vm488_vm0, %v506_v31, %v502_v32  ;;  %v455_v38 = vpop.xlane.xlu1 %454 }
 0x1d5   :  { %v556_v41 = vsel %vm555_vm2, %v507_v37, %v554_v36  ;;  %v449_v42 = vpop.xlane.xlu0 %448  ;;  %v551_v48 = vrot.slane %v455_v38, %v486_v9 }
 0x1d6   :  { %v558_v44 = vsel %vm557_vm3, %v516_v40, %v556_v41  ;;  %v538_v46 = vrot.slane %v449_v42, %v481_v17  ;;  %v594_v17 = vsub.s32 1, %v1144_v21 }
 0x1d7   :  { %v560_v49 = vsel %vm559_vm4, %v525_v43, %v558_v44  ;;  %v552_v53 = vsel %vm488_vm0, %v551_v48, %v547_v52 }
 0x1d8   :  { %v543_v50 = vsel %vm488_vm0, %v542_v45, %v538_v46  ;;  %v562_v51 = vsel %vm561_vm5, %v534_v47, %v560_v49 }
 0x1d9   :  { %v564_v54 = vsel %vm563_vm6, %v543_v50, %v562_v51 }
 0x1da   :  { %v566_v56 = vsel %vm565_vm7, %v552_v53, %v564_v54 }
 0x1dd   :  { %v461_v55 = vpop.permute.xlu0 %460 }
 0x1de   :  { %vm462_vm9 = vcmp.lt.s32.totalorder %v458_v3, %v461_v55 }
 0x1df   :  { %v568_v57 = vsel %vm462_vm9, %v566_v56, -inf }
 0x1e0   :  { %v570_v58 = vsel %vm569_vm8, %v568_v57, -inf }
 0x1e1   :  { %571 = vmax.xlane.f32.xlu1 %v570_v58 }
 0x26e   :  { %v572_v59 = vpop.xlane.xlu1 %571 }
 0x26f   :  { %v573_v60 = vsub.f32 %v568_v57, %v572_v59 }
 0x271   :  { %v574_v61 = vmul.f32 1.442695, %v573_v60 }
 0x273   :  { %952 = vpow2.f32 %v574_v61 }
 0x27d   :  { %v953_v62 = vpop.eup %952 }
 0x27e   :  { %v576_v63 = vsel %vm569_vm8, %v953_v62, 0.0 }
 0x27f   :  { %577 = vadd.xlane.f32.xlu1 %v576_v63 }
 0x30c   :  { %v578_v0 = vpop.xlane.xlu1 %577 }
 0x30d   :  { %954 = vrcp.f32 %v578_v0 }
 0x317   :  { %v955_v6 = vpop.eup %954 }
 0x318   :  { %v580_v3 = vmul.f32 %v955_v6, %v953_v62 }
 0x31a   :  { %757 = vst.msk [vmem:[#allocation8] sm:$0xff] %vm569_vm8, %v580_v3  ;;  %v617_v7 = vrot.slane %v580_v3, %v616_v2  ;;  %v584_v8 = vrot.slane %v580_v3, %v1151_v30  ;;  %v628_v9 = vrot.slane %v580_v3, %v627_v1  ;;  %v639_v18 = vrot.slane %v580_v3, %v638_v16 }
 0x31b   :  { %v595_v20 = vrot.slane %v580_v3, %v594_v17  ;;  %v650_v23 = vrot.slane %v580_v3, %v649_v22  ;;  %v660_v30 = vsub.s32 7, %v1144_v21  ;;  %v606_v26 = vrot.slane %v580_v3, %v605_v24 }
 0x31c   :  { %619 = vbcast.lane.b32.xlu0 %v617_v7, 256  ;;  %586 = vbcast.lane.b32.xlu1 %v584_v8, 256 }
 0x31d   :  { %v661_v25 = vrot.slane %v580_v3, %v660_v30 }
 0x320   :  { %630 = vbcast.lane.b32.xlu0 %v628_v9, 256  ;;  %590 = vbcast.lane.b32.xlu1 %v584_v8, 264 }
 0x324   :  { %641 = vbcast.lane.b32.xlu0 %v639_v18, 256  ;;  %597 = vbcast.lane.b32.xlu1 %v595_v20, 256 }
 0x328   :  { %652 = vbcast.lane.b32.xlu0 %v650_v23, 256  ;;  %601 = vbcast.lane.b32.xlu1 %v595_v20, 264 }
 0x32c   :  { %663 = vbcast.lane.b32.xlu0 %v661_v25, 256  ;;  %608 = vbcast.lane.b32.xlu1 %v606_v26, 256 }
 0x330   :  { %612 = vbcast.lane.b32.xlu1 %v606_v26, 264 }
 0x334   :  { %623 = vbcast.lane.b32.xlu1 %v617_v7, 264 }
 0x338   :  { %634 = vbcast.lane.b32.xlu1 %v628_v9, 264 }
 0x33c   :  { %645 = vbcast.lane.b32.xlu1 %v639_v18, 264 }
 0x340   :  { %656 = vbcast.lane.b32.xlu1 %v650_v23, 264 }
 0x344   :  { %667 = vbcast.lane.b32.xlu1 %v661_v25, 264 }
 0x345   :  { %1011 = shalt.err (!%p1008_p6)
}
 0x346   :  { %s1012_s29 = scalar_lea.hbm %s1267_s6, 128 }
 0x347   :  { %p1013_p7 = scmp.ne.s32.totalorder %s1267_s6, %s1012_s29  ;;  %p1016_p8 = scmp.lt.u32.totalorder %s1012_s29, %s1267_s6 }
 0x349   :  { %p1018_p9 = pnand %p1016_p8, %p1013_p7 }
 0x34b   :  { %1021 = shalt.err (!%p1018_p9)
}
 0x34c   :  { %794 = dma.vmem_to_hbm [thread:$0]  %s792_s25, 128, %s1267_s6, [#allocation9]   ;;  %v670_v27 = vunpack.c.h.bf16 %v1119_v4  ;;  %v671_v29 = vunpack.c.l.bf16 %v1125_v10  ;;  %v672_v31 = vunpack.c.h.bf16 %v1125_v10  ;;  %v669_v32 = vunpack.c.l.bf16 %v1119_v4 }
 0x34d   :  { %v673_v42 = vunpack.c.l.bf16 %v1129_v12  ;;  %v674_v43 = vunpack.c.h.bf16 %v1129_v12  ;;  %v675_v10 = vunpack.c.l.bf16 %v1136_v14  ;;  %v676_v49 = vunpack.c.h.bf16 %v1136_v14  ;;  %s1059_s6 = smov [#allocation7]  }
 0x34e   :  { %v677_v52 = vunpack.c.l.bf16 %v1121_v5  ;;  %v678_v55 = vunpack.c.h.bf16 %v1121_v5  ;;  %v679_v63 = vunpack.c.l.bf16 %v1127_v11  ;;  %v680_v14 = vunpack.c.h.bf16 %v1127_v11  ;;  %s781_s12 = sshll.u32 %s1059_s6, 4  ;;  %s782_s12 = int_to_ptr.vmem [resolvable:$true] %s781_s12 }
 0x34f   :  { %v681_v24 = vunpack.c.l.bf16 %v1131_v13  ;;  %v682_v11 = vunpack.c.h.bf16 %v1131_v13  ;;  %s1022_s13 = scalar_lea.vmem %s782_s12, 128  ;;  %p1027_p11 = scmp.lt.s32.totalorder %s782_s12, %s782_s12 }
 0x350   :  { %p1023_p10 = scmp.ne.s32.totalorder %s782_s12, %s1022_s13  ;;  %p1028_p12 = scmp.lt.s32.totalorder %s1022_s13, %s1022_s13 }
 0x352   :  { %p1029_p13 = por %p1028_p12, %p1027_p11 }
 0x354   :  { %p1030_p0 = pnand %p1029_p13, %p1023_p10 }
 0x38e   :  { %v587_v21 = vpop.permute.xlu1 %586  ;;  %v620_v37 = vpop.permute.xlu0 %619 }
 0x38f   :  { %v685_v38 = vmul.f32 %v669_v32, %v587_v21  ;;  %v691_v56 = vmul.f32 %v675_v10, %v620_v37 }
 0x392   :  { %v591_v19 = vpop.permute.xlu1 %590  ;;  %v631_v45 = vpop.permute.xlu0 %630 }
 0x393   :  { %v686_v33 = vmul.f32 %v670_v27, %v591_v19  ;;  %v693_v2 = vmul.f32 %v677_v52, %v631_v45 }
 0x395   :  { %v701_v40 = vadd.f32 %v686_v33, %v685_v38 }
 0x396   :  { %v598_v28 = vpop.permute.xlu1 %597  ;;  %v642_v58 = vpop.permute.xlu0 %641 }
 0x397   :  { %v687_v35 = vmul.f32 %v671_v29, %v598_v28  ;;  %v702_v46 = vrot.slane %v701_v40, 4  ;;  %v695_v20 = vmul.f32 %v679_v63, %v642_v58  ;;  %v683_v29 = vunpack.c.l.bf16 %v1139_v15 }
 0x399   :  { %v703_v53 = vadd.f32 %v702_v46, %v701_v40 }
 0x39a   :  { %v602_v34 = vpop.permute.xlu1 %601  ;;  %v653_v17 = vpop.permute.xlu0 %652 }
 0x39b   :  { %v688_v36 = vmul.f32 %v672_v31, %v602_v34  ;;  %v704_v62 = vrot.slane %v703_v53, 2 }
 0x39d   :  { %v708_v39 = vadd.f32 %v688_v36, %v687_v35  ;;  %v705_v16 = vadd.f32 %v704_v62, %v703_v53  ;;  %v684_v35 = vunpack.c.h.bf16 %v1139_v15  ;;  %v697_v36 = vmul.f32 %v681_v24, %v653_v17 }
 0x39e   :  { %v609_v41 = vpop.permute.xlu1 %608  ;;  %v664_v38 = vpop.permute.xlu0 %663 }
 0x39f   :  { %v709_v44 = vrot.slane %v708_v39, 4  ;;  %v689_v4 = vmul.f32 %v673_v42, %v609_v41  ;;  %v706_v28 = vrot.slane %v705_v16, 1  ;;  %v699_v46 = vmul.f32 %v683_v29, %v664_v38 }
 0x3a1   :  { %v710_v50 = vadd.f32 %v709_v44, %v708_v39  ;;  %v707_v42 = vadd.f32 %v706_v28, %v705_v16 }
 0x3a2   :  { %v613_v47 = vpop.permute.xlu1 %612 }
 0x3a3   :  { %v690_v48 = vmul.f32 %v674_v43, %v613_v47  ;;  %v711_v59 = vrot.slane %v710_v50, 2 }
 0x3a5   :  { %v715_v51 = vadd.f32 %v690_v48, %v689_v4  ;;  %v712_v8 = vadd.f32 %v711_v59, %v710_v50 }
 0x3a6   :  { %v624_v54 = vpop.permute.xlu1 %623 }
 0x3a7   :  { %v716_v12 = vrot.slane %v715_v51, 4  ;;  %v692_v57 = vmul.f32 %v676_v49, %v624_v54  ;;  %v713_v25 = vrot.slane %v712_v8, 1 }
 0x3a9   :  { %v717_v60 = vadd.f32 %v716_v12, %v715_v51  ;;  %v722_v61 = vadd.f32 %v692_v57, %v691_v56  ;;  %v714_v37 = vadd.f32 %v713_v25, %v712_v8 }
 0x3aa   :  { %v635_v0 = vpop.permute.xlu1 %634 }
 0x3ab   :  { %v718_v6 = vrot.slane %v717_v60, 2  ;;  %v723_v3 = vrot.slane %v722_v61, 4  ;;  %v694_v7 = vmul.f32 %v678_v55, %v635_v0  ;;  %v766_v48 = vsel %vm553_vm1, %v714_v37, %v707_v42 }
 0x3ad   :  { %v719_v1 = vadd.f32 %v718_v6, %v717_v60  ;;  %v724_v5 = vadd.f32 %v723_v3, %v722_v61  ;;  %v729_v9 = vadd.f32 %v694_v7, %v693_v2 }
 0x3ae   :  { %v646_v18 = vpop.permute.xlu1 %645 }
 0x3af   :  { %v725_v22 = vrot.slane %v724_v5, 2  ;;  %v730_v23 = vrot.slane %v729_v9, 4  ;;  %v696_v30 = vmul.f32 %v680_v14, %v646_v18  ;;  %v720_v26 = vrot.slane %v719_v1, 1 }
 0x3b1   :  { %v726_v21 = vadd.f32 %v725_v22, %v724_v5  ;;  %v731_v19 = vadd.f32 %v730_v23, %v729_v9  ;;  %v736_v27 = vadd.f32 %v696_v30, %v695_v20  ;;  %v721_v40 = vadd.f32 %v720_v26, %v719_v1 }
 0x3b2   :  { %v657_v31 = vpop.permute.xlu1 %656 }
 0x3b3   :  { %v727_v32 = vrot.slane %v726_v21, 1  ;;  %v732_v33 = vrot.slane %v731_v19, 2  ;;  %v737_v34 = vrot.slane %v736_v27, 4  ;;  %v698_v39 = vmul.f32 %v682_v11, %v657_v31 }
 0x3b4   :  { %v767_v15 = vsel %vm555_vm2, %v721_v40, %v766_v48 }
 0x3b5   :  { %v733_v41 = vadd.f32 %v732_v33, %v731_v19  ;;  %v738_v13 = vadd.f32 %v737_v34, %v736_v27  ;;  %v728_v43 = vadd.f32 %v727_v32, %v726_v21  ;;  %v743_v44 = vadd.f32 %v698_v39, %v697_v36 }
 0x3b6   :  { %v668_v45 = vpop.permute.xlu1 %667 }
 0x3b7   :  { %v734_v47 = vrot.slane %v733_v41, 1  ;;  %v739_v10 = vrot.slane %v738_v13, 2  ;;  %v700_v4 = vmul.f32 %v684_v35, %v668_v45  ;;  %v744_v49 = vrot.slane %v743_v44, 4 }
 0x3b8   :  { %v768_v54 = vsel %vm557_vm3, %v728_v43, %v767_v15 }
 0x3b9   :  { %v735_v50 = vadd.f32 %v734_v47, %v733_v41  ;;  %v740_v51 = vadd.f32 %v739_v10, %v738_v13  ;;  %v750_v52 = vadd.f32 %v700_v4, %v699_v46  ;;  %v745_v53 = vadd.f32 %v744_v49, %v743_v44 }
 0x3bb   :  { %v751_v55 = vrot.slane %v750_v52, 4  ;;  %v769_v56 = vsel %vm559_vm4, %v735_v50, %v768_v54  ;;  %v746_v12 = vrot.slane %v745_v53, 2  ;;  %v741_v57 = vrot.slane %v740_v51, 1 }
 0x3bd   :  { %v752_v58 = vadd.f32 %v751_v55, %v750_v52  ;;  %v747_v59 = vadd.f32 %v746_v12, %v745_v53  ;;  %v742_v62 = vadd.f32 %v741_v57, %v740_v51 }
 0x3bf   :  { %v753_v60 = vrot.slane %v752_v58, 2  ;;  %v748_v61 = vrot.slane %v747_v59, 1  ;;  %v770_v6 = vsel %vm561_vm5, %v742_v62, %v769_v56 }
 0x3c1   :  { %v754_v63 = vadd.f32 %v753_v60, %v752_v58  ;;  %v749_v0 = vadd.f32 %v748_v61, %v747_v59 }
 0x3c3   :  { %v755_v14 = vrot.slane %v754_v63, 1  ;;  %v771_v3 = vsel %vm563_vm6, %v749_v0, %v770_v6 }
 0x3c5   :  { %v756_v2 = vadd.f32 %v755_v14, %v754_v63 }
 0x3c7   :  { %v772_v7 = vsel %vm565_vm7, %v756_v2, %v771_v3 }
 0x3c8   :  { %774 = vst [vmem:[#allocation7] sm:$0xff] %v772_v7 }
 0x3c9   :  { %1033 = shalt.err (!%p1030_p0)
}
 0x3ca   :  { %s1034_s16 = scalar_lea.hbm %s1266_s5, 128 }
 0x3cb   :  { %p1035_p1 = scmp.ne.s32.totalorder %s1266_s5, %s1034_s16  ;;  %p1038_p2 = scmp.lt.u32.totalorder %s1034_s16, %s1266_s5 }
 0x3cd   :  { %p1040_p3 = pnand %p1038_p2, %p1035_p1 }
 0x3cf   :  { %1043 = shalt.err (!%p1040_p3)
}
 0x3d0   :  { %784 = dma.vmem_to_hbm [thread:$0]  %s782_s12, 128, %s1266_s5, [#allocation4]  }
 0x3d1   :  { %1048 = dma.done.wait [#allocation4], 128  }
 0x3d2   :  { %1049 = vsyncadd [#allocation4], 4294967168 }
 0x3d3   :  { %1050 = dma.done.wait [#allocation9], 128  }
 0x3d4   :  { %1051 = vsyncadd [#allocation9], 4294967168 }
 0x3d5   :  { %801 = vsyncpa [#allocation3], 1 }
 0x3d6   :  { %802 = vsyncpa [#allocation6], 1 }
 0x3d7   :  { %803 = vsyncpa [#allocation4], 1 }
 0x3d8   :  { %804 = vsyncpa [#allocation9], 1 }

// kernel: tpu_custom_call.1
= control target key start
LH: loop header
LB: loop body
LE: loop exit
PB: predicated region body
PF: predicated region fallthrough
CT: control target
= control target key end

     0   :  { %12 = vsyncpa [#allocation3], 0  ;;  %s1261_s0 = inlined_call_operand.vmem [shape: s32[8,1], index: 0, kind: input, shape index: {}]   ;;  %s1262_s1 = inlined_call_operand.hbm [shape: bf16[8,16,128], index: 1, kind: input, shape index: {}]   ;;  %s1263_s2 = inlined_call_operand.vmem [shape: f32[8,128], index: 2, kind: input, shape index: {}]   ;;  %s1264_s3 = inlined_call_operand.hbm [shape: bf16[128,128], index: 3, kind: input, shape index: {}]   ;;  %s1265_s4 = inlined_call_operand.vmem [shape: f32[1,128], index: 4, kind: input, shape index: {}]   ;;  %s1266_s5 = inlined_call_operand.hbm [shape: f32[8,128], index: 5, kind: output, shape index: {0}]   ;;  %s1267_s6 = inlined_call_operand.hbm [shape: f32[8,16], index: 6, kind: output, shape index: {1}]  }
   0x1   :  { %13 = vsyncpa [#allocation6], 0 }
   0x2   :  { %14 = vsyncpa [#allocation4], 0 }
   0x3   :  { %15 = vsyncpa [#allocation9], 0  ;;  %s1052_s21 = smov [#allocation2]   ;;  %s956_s25 = scalar_lea.hbm %s1262_s1, 1024 }
   0x4   :  { %s23_s22 = sshll.u32 %s1052_s21, 4  ;;  %p957_p0 = scmp.ne.s32.totalorder %s1262_s1, %s956_s25  ;;  %s24_s22 = int_to_ptr.vmem [resolvable:$true] %s23_s22 }
   0x5   :  { %p960_p1 = scmp.lt.u32.totalorder %s956_s25, %s1262_s1 }
   0x7   :  { %p962_p2 = pnand %p960_p1, %p957_p0 }
   0x9   :  { %965 = shalt.err (!%p962_p2)
}
   0xa   :  { %s966_s30 = scalar_lea.vmem %s24_s22, 1024  ;;  %p971_p4 = scmp.lt.s32.totalorder %s24_s22, %s24_s22 }
   0xb   :  { %p967_p3 = scmp.ne.s32.totalorder %s24_s22, %s966_s30  ;;  %p972_p5 = scmp.lt.s32.totalorder %s966_s30, %s966_s30 }
   0xd   :  { %p973_p6 = por %p972_p5, %p971_p4 }
   0xf   :  { %p974_p7 = pnand %p973_p6, %p967_p3 }
  0x11   :  { %977 = shalt.err (!%p974_p7)
}
  0x12   :  { %s1053_s7 = smov 64   ;;  %s1054_s8 = smov 4  }
  0x13   :  { %29 = dma.hbm_to_vmem [thread:$0]  %s1262_s1, 1024, %s24_s22, [#allocation3], %s1053_s7, %s1053_s7, %s1054_s8  }
  0x14   :  { %s1055_s11 = smov [#allocation5]   ;;  %s978_s15 = scalar_lea.hbm %s1264_s3, 1024 }
  0x15   :  { %s37_s12 = sshll.u32 %s1055_s11, 4  ;;  %p979_p8 = scmp.ne.s32.totalorder %s1264_s3, %s978_s15  ;;  %s38_s12 = int_to_ptr.vmem [resolvable:$true] %s37_s12 }
  0x16   :  { %p982_p9 = scmp.lt.u32.totalorder %s978_s15, %s1264_s3 }
  0x18   :  { %p984_p10 = pnand %p982_p9, %p979_p8 }
  0x1a   :  { %987 = shalt.err (!%p984_p10)
}
  0x1b   :  { %s988_s20 = scalar_lea.vmem %s38_s12, 1024  ;;  %p993_p12 = scmp.lt.s32.totalorder %s38_s12, %s38_s12 }
  0x1c   :  { %p989_p11 = scmp.ne.s32.totalorder %s38_s12, %s988_s20  ;;  %p994_p13 = scmp.lt.s32.totalorder %s988_s20, %s988_s20 }
  0x1e   :  { %p995_p0 = por %p994_p13, %p993_p12 }
  0x20   :  { %p996_p1 = pnand %p995_p0, %p989_p11 }
  0x22   :  { %999 = shalt.err (!%p996_p1)
}
  0x23   :  { %43 = dma.hbm_to_vmem [thread:$0]  %s1264_s3, 1024, %s38_s12, [#allocation6], %s1053_s7, %s1053_s7, %s1054_s8  }
  0x24   :  { %1044 = dma.done.wait [#allocation3], 1024  }
  0x25   :  { %1045 = vsyncadd [#allocation3], 4294966272 }
  0x26   :  { %1046 = dma.done.wait [#allocation6], 1024  }
  0x27   :  { %1047 = vsyncadd [#allocation6], 4294966272  ;;  %v895_v0 = vld [vmem:[#allocation5] sm:$0xff]   ;;  %v896_v1 = vld [vmem:[#allocation5 + $0x8] sm:$0xff]   ;;  %v1056_v16 = vmov 0   ;;  %v284_v19 = vlaneseq  ;;  %vm488_vm0 = vcmask 130112  }
  0x28   :  { %838 = vmatprep.subr.bf16.mxu0 %v895_v0  ;;  %870 = vmatprep.subr.bf16.mxu1 %v895_v0  ;;  %v897_v2 = vld [vmem:[#allocation5 + $0x10] sm:$0xff]   ;;  %v898_v3 = vld [vmem:[#allocation5 + $0x18] sm:$0xff]   ;;  %v1119_v4 = vld [vmem:[#allocation2] sm:$0xff]   ;;  %v1057_v17 = vmov 1966171168   ;;  %vm553_vm1 = vcmask 1041409  }
  0x29   :  { %839 = vmatpush3.bf16.msra.mxu0 %v895_v0  ;;  %878 = vmatpush3.bf16.msra.mxu1 %v895_v0  ;;  %v1121_v5 = vld [vmem:[#allocation2 + $0x20] sm:$0xff]   ;;  %v900_v7 = vld [vmem:[#allocation5 + $0x28] sm:$0xff]   ;;  %v901_v8 = vld [vmem:[#allocation5 + $0x30] sm:$0xff]   ;;  %v282_v18 = vunpack.c.l.s4 %v1057_v17  ;;  %v1144_v21 = vshrl.u32 %v284_v19, 7  ;;  %vm555_vm2 = vcmask 1042434   ;;  %vm557_vm3 = vcmask 1043459  }
  0x2a   :  { %840 = vmatprep.subr.bf16.mxu0 %v896_v1  ;;  %871 = vmatprep.subr.bf16.mxu1 %v896_v1  ;;  %v899_v6 = vld [vmem:[#allocation5 + $0x20] sm:$0xff]   ;;  %v902_v9 = vld [vmem:[#allocation5 + $0x38] sm:$0xff]   ;;  %v1125_v10 = vld [vmem:[#allocation2 + $0x8] sm:$0xff]   ;;  %vm559_vm4 = vcmask 1044484   ;;  %vm561_vm5 = vcmask 1045509   ;;  %vm563_vm6 = vcmask 1046534  }
  0x2b   :  { %854 = vmatprep.mubr.bf16.mxu0 %v1119_v4  ;;  %862 = vmatprep.mubr.bf16.mxu1 %v1121_v5  ;;  %v1127_v11 = vld [vmem:[#allocation2 + $0x28] sm:$0xff]   ;;  %v1129_v12 = vld [vmem:[#allocation2 + $0x10] sm:$0xff]   ;;  %v1136_v14 = vld [vmem:[#allocation2 + $0x18] sm:$0xff]   ;;  %v283_v20 = vunpack.c.0.s8 %v282_v18  ;;  %v1151_v30 = vsub.s32 0, %v1144_v21  ;;  %vm565_vm7 = vcmask 1047559   ;;  %vm569_vm8 = vcmask 130048  }
  0x2c   :  { %v1131_v13 = vld [vmem:[#allocation2 + $0x30] sm:$0xff]   ;;  %v1139_v15 = vld [vmem:[#allocation2 + $0x38] sm:$0xff]   ;;  %894 = vset.pattern.permute.xlu0 %v1056_v16 }
  0x2d   :  { %841 = vmatpush3.bf16.msra.mxu0 %v896_v1  ;;  %879 = vmatpush3.bf16.msra.mxu1 %v896_v1  ;;  %v278_v22 = vld [vmem:[%s1263_s2] sm:$0xff]  ;;  %v286_v23 = vsub.s32 %v283_v20, %v1144_v21 }
  0x2e   :  { %842 = vmatprep.subr.bf16.mxu0 %v897_v2  ;;  %872 = vmatprep.subr.bf16.mxu1 %v897_v2  ;;  %v280_v24 = vcombine.high %v278_v22, %v278_v22  ;;  %v1161_v1 = vld [vmem:[%s1265_s4] ss:$0 sm:$0xff] }
  0x2f   :  { %v287_v25 = vrot.slane %v278_v22, %v286_v23 }
  0x30   :  { %v294_v26 = vrot.slane %v280_v24, %v286_v23 }
  0x31   :  { %843 = vmatpush3.bf16.msra.mxu0 %v897_v2  ;;  %880 = vmatpush3.bf16.msra.mxu1 %v897_v2  ;;  %v295_v27 = vcombine.high %v287_v25, %v287_v25  ;;  %v303_v32 = vrot.slane %v287_v25, %v286_v23 }
  0x32   :  { %844 = vmatprep.subr.bf16.mxu0 %v898_v3  ;;  %873 = vmatprep.subr.bf16.mxu1 %v898_v3  ;;  %v296_v28 = vcombine.high %v294_v26, %v294_v26  ;;  %v310_v36 = vrot.slane %v294_v26, %v286_v23 }
  0x33   :  { %v317_v29 = vrot.slane %v295_v27, %v286_v23  ;;  %v332_v35 = vrot.slane %v303_v32, %v1151_v30  ;;  %v325_v59 = vcombine.high %v303_v32, %v303_v32 }
  0x34   :  { %v324_v31 = vrot.slane %v296_v28, %v286_v23  ;;  %v348_v44 = vrot.slane %v310_v36, %v1151_v30  ;;  %v326_v16 = vcombine.high %v310_v36, %v310_v36 }
  0x35   :  { %845 = vmatpush3.bf16.msra.mxu0 %v898_v3  ;;  %881 = vmatpush3.bf16.msra.mxu1 %v898_v3  ;;  %v336_v33 = vrot.slane %v317_v29, %v1151_v30  ;;  %v327_v50 = vcombine.high %v317_v29, %v317_v29 }
  0x36   :  { %846 = vmatprep.subr.bf16.mxu0 %v899_v6  ;;  %874 = vmatprep.subr.bf16.mxu1 %v899_v6  ;;  %v352_v34 = vrot.slane %v324_v31, %v1151_v30  ;;  %v328_v56 = vcombine.high %v324_v31, %v324_v31  ;;  %v356_v26 = vrot.slane %v326_v16, %v1151_v30 }
  0x37   :  { %v344_v53 = vrot.slane %v327_v50, %v1151_v30 }
  0x39   :  { %847 = vmatpush3.bf16.msra.mxu0 %v899_v6  ;;  %882 = vmatpush3.bf16.msra.mxu1 %v899_v6 }
  0x3a   :  { %848 = vmatprep.subr.bf16.mxu0 %v900_v7  ;;  %875 = vmatprep.subr.bf16.mxu1 %v900_v7 }
  0x3d   :  { %849 = vmatpush3.bf16.msra.mxu0 %v900_v7  ;;  %883 = vmatpush3.bf16.msra.mxu1 %v900_v7  ;;  %v360_v7 = vrot.slane %v328_v56, %v1151_v30 }
  0x3e   :  { %850 = vmatprep.subr.bf16.mxu0 %v901_v8  ;;  %876 = vmatprep.subr.bf16.mxu1 %v901_v8 }
  0x41   :  { %851 = vmatpush3.bf16.msra.mxu0 %v901_v8  ;;  %884 = vmatpush3.bf16.msra.mxu1 %v901_v8 }
  0x42   :  { %852 = vmatprep.subr.bf16.mxu0 %v902_v9  ;;  %877 = vmatprep.subr.bf16.mxu1 %v902_v9 }
  0x45   :  { %853 = vmatpush3.bf16.msra.mxu0 %v902_v9  ;;  %885 = vmatpush3.bf16.msra.mxu1 %v902_v9  ;;  %v340_v9 = vrot.slane %v325_v59, %v1151_v30 }
  0x48   :  { %855 = vmatmul.mubr.bf16.vlgmr.msra.gmra.mrb[0].mxu0 %v1125_v10  ;;  %863 = vmatmul.mubr.bf16.vlgmr.msra.gmra.mrb[0].mxu1 %v1127_v11 }
  0x49   :  { %858 = vmatprep.mubr.bf16.mxu0 %v1129_v12  ;;  %866 = vmatprep.mubr.bf16.mxu1 %v1131_v13 }
  0x50   :  { %859 = vmatmul.mubr.bf16.gmra.mrb[4].mxu0 %v1136_v14  ;;  %867 = vmatmul.mubr.bf16.gmra.mrb[4].mxu1 %v1139_v15 }
 0x11b   :  { %v856_v37 = vpop.f32.mrb[0].mxu0  ;;  %v864_v38 = vpop.f32.mrb[0].mxu1 }
 0x11c   :  { %v371_v39 = vadd.f32 %v856_v37, %v336_v33  ;;  %v379_v40 = vadd.f32 %v864_v38, %v352_v34  ;;  %v215_v41 = vpop.f32.mrb[1].mxu0  ;;  %v247_v42 = vpop.f32.mrb[1].mxu1 }
 0x11d   :  { %v369_v43 = vadd.f32 %v332_v35, %v215_v41  ;;  %v857_v45 = vpop.f32.mrb[2].mxu0  ;;  %v865_v46 = vpop.f32.mrb[2].mxu1  ;;  %v377_v52 = vadd.f32 %v348_v44, %v247_v42 }
 0x11e   :  { %920 = vtanh.f32 %v371_v39  ;;  %v372_v47 = vadd.f32 %v857_v45, %v336_v33  ;;  %v218_v48 = vpop.f32.mrb[3].mxu0  ;;  %v250_v49 = vpop.f32.mrb[3].mxu1  ;;  %v380_v51 = vadd.f32 %v865_v46, %v352_v34 }
 0x11f   :  { %922 = vtanh.f32 %v379_v40  ;;  %v378_v57 = vadd.f32 %v348_v44, %v250_v49  ;;  %v370_v61 = vadd.f32 %v332_v35, %v218_v48 }
 0x120   :  { %924 = vtanh.f32 %v369_v43 }
 0x121   :  { %926 = vtanh.f32 %v372_v47 }
 0x122   :  { %928 = vtanh.f32 %v380_v51 }
 0x123   :  { %v860_v54 = vpop.f32.mrb[4].mxu0  ;;  %v868_v55 = vpop.f32.mrb[4].mxu1  ;;  %930 = vtanh.f32 %v377_v52 }
 0x124   :  { %v231_v58 = vpop.f32.mrb[5].mxu0  ;;  %v263_v60 = vpop.f32.mrb[5].mxu1  ;;  %v375_v6 = vadd.f32 %v860_v54, %v344_v53  ;;  %932 = vtanh.f32 %v378_v57  ;;  %v383_v23 = vadd.f32 %v868_v55, %v360_v7 }
 0x125   :  { %v861_v62 = vpop.f32.mrb[6].mxu0  ;;  %v869_v63 = vpop.f32.mrb[6].mxu1  ;;  %934 = vtanh.f32 %v370_v61  ;;  %v373_v33 = vadd.f32 %v340_v9, %v231_v58  ;;  %v381_v41 = vadd.f32 %v356_v26, %v263_v60  ;;  %v456_v58 = vld [vmem:[%s1261_s0] sm:$0xff]  ;;  %s1058_s0 = smov [#allocation8]  }
 0x126   :  { %v376_v0 = vadd.f32 %v861_v62, %v344_v53  ;;  %v234_v2 = vpop.f32.mrb[7].mxu0  ;;  %v266_v3 = vpop.f32.mrb[7].mxu1  ;;  %v384_v39 = vadd.f32 %v869_v63, %v360_v7  ;;  %s791_s25 = sshll.u32 %s1058_s0, 4  ;;  %s792_s25 = int_to_ptr.vmem [resolvable:$true] %s791_s25 }
 0x127   :  { %v374_v25 = vadd.f32 %v340_v9, %v234_v2  ;;  %v382_v32 = vadd.f32 %v356_v26, %v266_v3  ;;  %v458_v3 = vand.u32 127, %v284_v19  ;;  %s1000_s26 = scalar_lea.vmem %s792_s25, 128  ;;  %p1005_p3 = scmp.lt.s32.totalorder %s792_s25, %s792_s25 }
 0x128   :  { %v921_v8 = vpop.eup %920  ;;  %936 = vtanh.f32 %v376_v0  ;;  %p1001_p2 = scmp.ne.s32.totalorder %s792_s25, %s1000_s26  ;;  %p1006_p4 = scmp.lt.s32.totalorder %s1000_s26, %s1000_s26 }
 0x129   :  { %v923_v17 = vpop.eup %922  ;;  %v410_v18 = vmul.f32 %v921_v8, %v1161_v1  ;;  %938 = vtanh.f32 %v375_v6  ;;  %v483_v7 = vadd.s32 4294967288, %v458_v3 }
 0x12a   :  { %v925_v20 = vpop.eup %924  ;;  %v418_v22 = vmul.f32 %v923_v17, %v1161_v1  ;;  %940 = vtanh.f32 %v383_v23  ;;  %v481_v17 = vsub.s32 %v458_v3, %v1144_v21  ;;  %p1007_p5 = por %p1006_p4, %p1005_p3 }
 0x12b   :  { %428 = vadd.xlane.f32.xlu1 %v410_v18  ;;  %v927_v24 = vpop.eup %926  ;;  %v408_v27 = vmul.f32 %v925_v20, %v1161_v1  ;;  %942 = vtanh.f32 %v374_v25  ;;  %v486_v9 = vsub.s32 %v483_v7, %v1144_v21 }
 0x12c   :  { %444 = vadd.xlane.f32.xlu0 %v418_v22  ;;  %v411_v28 = vmul.f32 %v927_v24, %v1161_v1  ;;  %v929_v29 = vpop.eup %928  ;;  %944 = vtanh.f32 %v382_v32  ;;  %p1008_p6 = pnand %p1007_p5, %p1001_p2 }
 0x12d   :  { %v931_v31 = vpop.eup %930  ;;  %v419_v34 = vmul.f32 %v929_v29, %v1161_v1  ;;  %946 = vtanh.f32 %v373_v33 }
 0x12e   :  { %v933_v35 = vpop.eup %932  ;;  %v416_v36 = vmul.f32 %v931_v31, %v1161_v1  ;;  %948 = vtanh.f32 %v384_v39 }
 0x12f   :  { %430 = vadd.xlane.f32.xlu1 %v411_v28  ;;  %v935_v37 = vpop.eup %934  ;;  %v417_v42 = vmul.f32 %v933_v35, %v1161_v1  ;;  %950 = vtanh.f32 %v381_v41 }
 0x130   :  { %424 = vadd.xlane.f32.xlu0 %v408_v27  ;;  %v409_v43 = vmul.f32 %v935_v37, %v1161_v1 }
 0x132   :  { %v937_v38 = vpop.eup %936 }
 0x133   :  { %446 = vadd.xlane.f32.xlu1 %v419_v34  ;;  %v939_v40 = vpop.eup %938  ;;  %v415_v44 = vmul.f32 %v937_v38, %v1161_v1 }
 0x134   :  { %440 = vadd.xlane.f32.xlu0 %v416_v36  ;;  %v414_v45 = vmul.f32 %v939_v40, %v1161_v1  ;;  %v941_v46 = vpop.eup %940 }
 0x135   :  { %v943_v47 = vpop.eup %942  ;;  %v422_v48 = vmul.f32 %v941_v46, %v1161_v1 }
 0x136   :  { %v413_v49 = vmul.f32 %v943_v47, %v1161_v1  ;;  %v945_v50 = vpop.eup %944 }
 0x137   :  { %442 = vadd.xlane.f32.xlu1 %v417_v42  ;;  %v947_v51 = vpop.eup %946  ;;  %v421_v52 = vmul.f32 %v945_v50, %v1161_v1 }
 0x138   :  { %426 = vadd.xlane.f32.xlu0 %v409_v43  ;;  %v949_v53 = vpop.eup %948  ;;  %v412_v54 = vmul.f32 %v947_v51, %v1161_v1 }
 0x139   :  { %v951_v55 = vpop.eup %950  ;;  %v423_v56 = vmul.f32 %v949_v53, %v1161_v1 }
 0x13a   :  { %v420_v57 = vmul.f32 %v951_v55, %v1161_v1 }
 0x13b   :  { %438 = vadd.xlane.f32.xlu1 %v415_v44 }
 0x13c   :  { %436 = vadd.xlane.f32.xlu0 %v414_v45 }
 0x13f   :  { %434 = vadd.xlane.f32.xlu1 %v413_v49 }
 0x140   :  { %452 = vadd.xlane.f32.xlu0 %v422_v48 }
 0x143   :  { %450 = vadd.xlane.f32.xlu1 %v421_v52 }
 0x144   :  { %432 = vadd.xlane.f32.xlu0 %v412_v54 }
 0x147   :  { %454 = vadd.xlane.f32.xlu1 %v423_v56 }
 0x148   :  { %448 = vadd.xlane.f32.xlu0 %v420_v57 }
 0x15e   :  { %460 = vperm.xlu0 %894, %v456_v58  }
 0x1b8   :  { %v429_v59 = vpop.xlane.xlu1 %428 }
 0x1b9   :  { %v445_v60 = vpop.xlane.xlu0 %444  ;;  %v493_v22 = vrot.slane %v429_v59, %v481_v17 }
 0x1ba   :  { %v529_v39 = vrot.slane %v445_v60, %v481_v17 }
 0x1bc   :  { %v431_v61 = vpop.xlane.xlu1 %430 }
 0x1bd   :  { %v425_v62 = vpop.xlane.xlu0 %424  ;;  %v497_v24 = vrot.slane %v431_v61, %v486_v9 }
 0x1be   :  { %v482_v23 = vrot.slane %v425_v62, %v481_v17 }
 0x1bf   :  { %v498_v33 = vsel %vm488_vm0, %v497_v24, %v493_v22  ;;  %v649_v22 = vsub.s32 6, %v1144_v21  ;;  %v605_v24 = vsub.s32 2, %v1144_v21 }
 0x1c0   :  { %v447_v63 = vpop.xlane.xlu1 %446 }
 0x1c1   :  { %v441_v0 = vpop.xlane.xlu0 %440  ;;  %v533_v34 = vrot.slane %v447_v63, %v486_v9 }
 0x1c2   :  { %v520_v35 = vrot.slane %v441_v0, %v481_v17 }
 0x1c3   :  { %v534_v47 = vsel %vm488_vm0, %v533_v34, %v529_v39 }
 0x1c4   :  { %v443_v2 = vpop.xlane.xlu1 %442 }
 0x1c5   :  { %v427_v6 = vpop.xlane.xlu0 %426  ;;  %v524_v29 = vrot.slane %v443_v2, %v486_v9  ;;  %v616_v2 = vsub.s32 3, %v1144_v21 }
 0x1c6   :  { %v487_v18 = vrot.slane %v427_v6, %v486_v9 }
 0x1c7   :  { %v525_v43 = vsel %vm488_vm0, %v524_v29, %v520_v35 }
 0x1c8   :  { %v439_v8 = vpop.xlane.xlu1 %438  ;;  %v489_v26 = vsel %vm488_vm0, %v487_v18, %v482_v23 }
 0x1c9   :  { %v437_v1 = vpop.xlane.xlu0 %436  ;;  %v515_v27 = vrot.slane %v439_v8, %v486_v9  ;;  %v554_v36 = vsel %vm553_vm1, %v498_v33, %v489_v26 }
 0x1ca   :  { %v511_v19 = vrot.slane %v437_v1, %v481_v17  ;;  %v627_v1 = vsub.s32 4, %v1144_v21 }
 0x1cc   :  { %v435_v16 = vpop.xlane.xlu1 %434  ;;  %v516_v40 = vsel %vm488_vm0, %v515_v27, %v511_v19 }
 0x1cd   :  { %v453_v20 = vpop.xlane.xlu0 %452  ;;  %v506_v31 = vrot.slane %v435_v16, %v486_v9  ;;  %v638_v16 = vsub.s32 5, %v1144_v21 }
 0x1ce   :  { %v547_v52 = vrot.slane %v453_v20, %v481_v17 }
 0x1d0   :  { %v451_v25 = vpop.xlane.xlu1 %450 }
 0x1d1   :  { %v433_v28 = vpop.xlane.xlu0 %432  ;;  %v542_v45 = vrot.slane %v451_v25, %v486_v9 }
 0x1d2   :  { %v502_v32 = vrot.slane %v433_v28, %v481_v17 }
 0x1d4   :  { %v507_v37 = vsel %vm488_vm0, %v506_v31, %v502_v32  ;;  %v455_v38 = vpop.xlane.xlu1 %454 }
 0x1d5   :  { %v556_v41 = vsel %vm555_vm2, %v507_v37, %v554_v36  ;;  %v449_v42 = vpop.xlane.xlu0 %448  ;;  %v551_v48 = vrot.slane %v455_v38, %v486_v9 }
 0x1d6   :  { %v558_v44 = vsel %vm557_vm3, %v516_v40, %v556_v41  ;;  %v538_v46 = vrot.slane %v449_v42, %v481_v17  ;;  %v594_v17 = vsub.s32 1, %v1144_v21 }
 0x1d7   :  { %v560_v49 = vsel %vm559_vm4, %v525_v43, %v558_v44  ;;  %v552_v53 = vsel %vm488_vm0, %v551_v48, %v547_v52 }
 0x1d8   :  { %v543_v50 = vsel %vm488_vm0, %v542_v45, %v538_v46  ;;  %v562_v51 = vsel %vm561_vm5, %v534_v47, %v560_v49 }
 0x1d9   :  { %v564_v54 = vsel %vm563_vm6, %v543_v50, %v562_v51 }
 0x1da   :  { %v566_v56 = vsel %vm565_vm7, %v552_v53, %v564_v54 }
 0x1dd   :  { %v461_v55 = vpop.permute.xlu0 %460 }
 0x1de   :  { %vm462_vm9 = vcmp.lt.s32.totalorder %v458_v3, %v461_v55 }
 0x1df   :  { %v568_v57 = vsel %vm462_vm9, %v566_v56, -inf }
 0x1e0   :  { %v570_v58 = vsel %vm569_vm8, %v568_v57, -inf }
 0x1e1   :  { %571 = vmax.xlane.f32.xlu1 %v570_v58 }
 0x26e   :  { %v572_v59 = vpop.xlane.xlu1 %571 }
 0x26f   :  { %v573_v60 = vsub.f32 %v568_v57, %v572_v59 }
 0x271   :  { %v574_v61 = vmul.f32 1.442695, %v573_v60 }
 0x273   :  { %952 = vpow2.f32 %v574_v61 }
 0x27d   :  { %v953_v62 = vpop.eup %952 }
 0x27e   :  { %v576_v63 = vsel %vm569_vm8, %v953_v62, 0.0 }
 0x27f   :  { %577 = vadd.xlane.f32.xlu1 %v576_v63 }
 0x30c   :  { %v578_v0 = vpop.xlane.xlu1 %577 }
 0x30d   :  { %954 = vrcp.f32 %v578_v0 }
 0x317   :  { %v955_v6 = vpop.eup %954 }
 0x318   :  { %v580_v3 = vmul.f32 %v955_v6, %v953_v62 }
 0x31a   :  { %757 = vst.msk [vmem:[#allocation8] sm:$0xff] %vm569_vm8, %v580_v3  ;;  %v617_v7 = vrot.slane %v580_v3, %v616_v2  ;;  %v584_v8 = vrot.slane %v580_v3, %v1151_v30  ;;  %v628_v9 = vrot.slane %v580_v3, %v627_v1  ;;  %v639_v18 = vrot.slane %v580_v3, %v638_v16 }
 0x31b   :  { %v595_v20 = vrot.slane %v580_v3, %v594_v17  ;;  %v650_v23 = vrot.slane %v580_v3, %v649_v22  ;;  %v660_v30 = vsub.s32 7, %v1144_v21  ;;  %v606_v26 = vrot.slane %v580_v3, %v605_v24 }
 0x31c   :  { %619 = vbcast.lane.b32.xlu0 %v617_v7, 256  ;;  %586 = vbcast.lane.b32.xlu1 %v584_v8, 256 }
 0x31d   :  { %v661_v25 = vrot.slane %v580_v3, %v660_v30 }
 0x320   :  { %630 = vbcast.lane.b32.xlu0 %v628_v9, 256  ;;  %590 = vbcast.lane.b32.xlu1 %v584_v8, 264 }
 0x324   :  { %641 = vbcast.lane.b32.xlu0 %v639_v18, 256  ;;  %597 = vbcast.lane.b32.xlu1 %v595_v20, 256 }
 0x328   :  { %652 = vbcast.lane.b32.xlu0 %v650_v23, 256  ;;  %601 = vbcast.lane.b32.xlu1 %v595_v20, 264 }
 0x32c   :  { %663 = vbcast.lane.b32.xlu0 %v661_v25, 256  ;;  %608 = vbcast.lane.b32.xlu1 %v606_v26, 256 }
 0x330   :  { %612 = vbcast.lane.b32.xlu1 %v606_v26, 264 }
 0x334   :  { %623 = vbcast.lane.b32.xlu1 %v617_v7, 264 }
 0x338   :  { %634 = vbcast.lane.b32.xlu1 %v628_v9, 264 }
 0x33c   :  { %645 = vbcast.lane.b32.xlu1 %v639_v18, 264 }
 0x340   :  { %656 = vbcast.lane.b32.xlu1 %v650_v23, 264 }
 0x344   :  { %667 = vbcast.lane.b32.xlu1 %v661_v25, 264 }
 0x345   :  { %1011 = shalt.err (!%p1008_p6)
}
 0x346   :  { %s1012_s29 = scalar_lea.hbm %s1267_s6, 128 }
 0x347   :  { %p1013_p7 = scmp.ne.s32.totalorder %s1267_s6, %s1012_s29  ;;  %p1016_p8 = scmp.lt.u32.totalorder %s1012_s29, %s1267_s6 }
 0x349   :  { %p1018_p9 = pnand %p1016_p8, %p1013_p7 }
 0x34b   :  { %1021 = shalt.err (!%p1018_p9)
}
 0x34c   :  { %794 = dma.vmem_to_hbm [thread:$0]  %s792_s25, 128, %s1267_s6, [#allocation9]   ;;  %v670_v27 = vunpack.c.h.bf16 %v1119_v4  ;;  %v671_v29 = vunpack.c.l.bf16 %v1125_v10  ;;  %v672_v31 = vunpack.c.h.bf16 %v1125_v10  ;;  %v669_v32 = vunpack.c.l.bf16 %v1119_v4 }
 0x34d   :  { %v673_v42 = vunpack.c.l.bf16 %v1129_v12  ;;  %v674_v43 = vunpack.c.h.bf16 %v1129_v12  ;;  %v675_v10 = vunpack.c.l.bf16 %v1136_v14  ;;  %v676_v49 = vunpack.c.h.bf16 %v1136_v14  ;;  %s1059_s6 = smov [#allocation7]  }
 0x34e   :  { %v677_v52 = vunpack.c.l.bf16 %v1121_v5  ;;  %v678_v55 = vunpack.c.h.bf16 %v1121_v5  ;;  %v679_v63 = vunpack.c.l.bf16 %v1127_v11  ;;  %v680_v14 = vunpack.c.h.bf16 %v1127_v11  ;;  %s781_s12 = sshll.u32 %s1059_s6, 4  ;;  %s782_s12 = int_to_ptr.vmem [resolvable:$true] %s781_s12 }
 0x34f   :  { %v681_v24 = vunpack.c.l.bf16 %v1131_v13  ;;  %v682_v11 = vunpack.c.h.bf16 %v1131_v13  ;;  %s1022_s13 = scalar_lea.vmem %s782_s12, 128  ;;  %p1027_p11 = scmp.lt.s32.totalorder %s782_s12, %s782_s12 }
 0x350   :  { %p1023_p10 = scmp.ne.s32.totalorder %s782_s12, %s1022_s13  ;;  %p1028_p12 = scmp.lt.s32.totalorder %s1022_s13, %s1022_s13 }
 0x352   :  { %p1029_p13 = por %p1028_p12, %p1027_p11 }
 0x354   :  { %p1030_p0 = pnand %p1029_p13, %p1023_p10 }
 0x38e   :  { %v587_v21 = vpop.permute.xlu1 %586  ;;  %v620_v37 = vpop.permute.xlu0 %619 }
 0x38f   :  { %v685_v38 = vmul.f32 %v669_v32, %v587_v21  ;;  %v691_v56 = vmul.f32 %v675_v10, %v620_v37 }
 0x392   :  { %v591_v19 = vpop.permute.xlu1 %590  ;;  %v631_v45 = vpop.permute.xlu0 %630 }
 0x393   :  { %v686_v33 = vmul.f32 %v670_v27, %v591_v19  ;;  %v693_v2 = vmul.f32 %v677_v52, %v631_v45 }
 0x395   :  { %v701_v40 = vadd.f32 %v686_v33, %v685_v38 }
 0x396   :  { %v598_v28 = vpop.permute.xlu1 %597  ;;  %v642_v58 = vpop.permute.xlu0 %641 }
 0x397   :  { %v687_v35 = vmul.f32 %v671_v29, %v598_v28  ;;  %v702_v46 = vrot.slane %v701_v40, 4  ;;  %v695_v20 = vmul.f32 %v679_v63, %v642_v58  ;;  %v683_v29 = vunpack.c.l.bf16 %v1139_v15 }
 0x399   :  { %v703_v53 = vadd.f32 %v702_v46, %v701_v40 }
 0x39a   :  { %v602_v34 = vpop.permute.xlu1 %601  ;;  %v653_v17 = vpop.permute.xlu0 %652 }
 0x39b   :  { %v688_v36 = vmul.f32 %v672_v31, %v602_v34  ;;  %v704_v62 = vrot.slane %v703_v53, 2 }
 0x39d   :  { %v708_v39 = vadd.f32 %v688_v36, %v687_v35  ;;  %v705_v16 = vadd.f32 %v704_v62, %v703_v53  ;;  %v684_v35 = vunpack.c.h.bf16 %v1139_v15  ;;  %v697_v36 = vmul.f32 %v681_v24, %v653_v17 }
 0x39e   :  { %v609_v41 = vpop.permute.xlu1 %608  ;;  %v664_v38 = vpop.permute.xlu0 %663 }
 0x39f   :  { %v709_v44 = vrot.slane %v708_v39, 4  ;;  %v689_v4 = vmul.f32 %v673_v42, %v609_v41  ;;  %v706_v28 = vrot.slane %v705_v16, 1  ;;  %v699_v46 = vmul.f32 %v683_v29, %v664_v38 }
 0x3a1   :  { %v710_v50 = vadd.f32 %v709_v44, %v708_v39  ;;  %v707_v42 = vadd.f32 %v706_v28, %v705_v16 }
 0x3a2   :  { %v613_v47 = vpop.permute.xlu1 %612 }
 0x3a3   :  { %v690_v48 = vmul.f32 %v674_v43, %v613_v47  ;;  %v711_v59 = vrot.slane %v710_v50, 2 }
 0x3a5   :  { %v715_v51 = vadd.f32 %v690_v48, %v689_v4  ;;  %v712_v8 = vadd.f32 %v711_v59, %v710_v50 }
 0x3a6   :  { %v624_v54 = vpop.permute.xlu1 %623 }
 0x3a7   :  { %v716_v12 = vrot.slane %v715_v51, 4  ;;  %v692_v57 = vmul.f32 %v676_v49, %v624_v54  ;;  %v713_v25 = vrot.slane %v712_v8, 1 }
 0x3a9   :  { %v717_v60 = vadd.f32 %v716_v12, %v715_v51  ;;  %v722_v61 = vadd.f32 %v692_v57, %v691_v56  ;;  %v714_v37 = vadd.f32 %v713_v25, %v712_v8 }
 0x3aa   :  { %v635_v0 = vpop.permute.xlu1 %634 }
 0x3ab   :  { %v718_v6 = vrot.slane %v717_v60, 2  ;;  %v723_v3 = vrot.slane %v722_v61, 4  ;;  %v694_v7 = vmul.f32 %v678_v55, %v635_v0  ;;  %v766_v48 = vsel %vm553_vm1, %v714_v37, %v707_v42 }
 0x3ad   :  { %v719_v1 = vadd.f32 %v718_v6, %v717_v60  ;;  %v724_v5 = vadd.f32 %v723_v3, %v722_v61  ;;  %v729_v9 = vadd.f32 %v694_v7, %v693_v2 }
 0x3ae   :  { %v646_v18 = vpop.permute.xlu1 %645 }
 0x3af   :  { %v725_v22 = vrot.slane %v724_v5, 2  ;;  %v730_v23 = vrot.slane %v729_v9, 4  ;;  %v696_v30 = vmul.f32 %v680_v14, %v646_v18  ;;  %v720_v26 = vrot.slane %v719_v1, 1 }
 0x3b1   :  { %v726_v21 = vadd.f32 %v725_v22, %v724_v5  ;;  %v731_v19 = vadd.f32 %v730_v23, %v729_v9  ;;  %v736_v27 = vadd.f32 %v696_v30, %v695_v20  ;;  %v721_v40 = vadd.f32 %v720_v26, %v719_v1 }
 0x3b2   :  { %v657_v31 = vpop.permute.xlu1 %656 }
 0x3b3   :  { %v727_v32 = vrot.slane %v726_v21, 1  ;;  %v732_v33 = vrot.slane %v731_v19, 2  ;;  %v737_v34 = vrot.slane %v736_v27, 4  ;;  %v698_v39 = vmul.f32 %v682_v11, %v657_v31 }
 0x3b4   :  { %v767_v15 = vsel %vm555_vm2, %v721_v40, %v766_v48 }
 0x3b5   :  { %v733_v41 = vadd.f32 %v732_v33, %v731_v19  ;;  %v738_v13 = vadd.f32 %v737_v34, %v736_v27  ;;  %v728_v43 = vadd.f32 %v727_v32, %v726_v21  ;;  %v743_v44 = vadd.f32 %v698_v39, %v697_v36 }
 0x3b6   :  { %v668_v45 = vpop.permute.xlu1 %667 }
 0x3b7   :  { %v734_v47 = vrot.slane %v733_v41, 1  ;;  %v739_v10 = vrot.slane %v738_v13, 2  ;;  %v700_v4 = vmul.f32 %v684_v35, %v668_v45  ;;  %v744_v49 = vrot.slane %v743_v44, 4 }
 0x3b8   :  { %v768_v54 = vsel %vm557_vm3, %v728_v43, %v767_v15 }
 0x3b9   :  { %v735_v50 = vadd.f32 %v734_v47, %v733_v41  ;;  %v740_v51 = vadd.f32 %v739_v10, %v738_v13  ;;  %v750_v52 = vadd.f32 %v700_v4, %v699_v46  ;;  %v745_v53 = vadd.f32 %v744_v49, %v743_v44 }
 0x3bb   :  { %v751_v55 = vrot.slane %v750_v52, 4  ;;  %v769_v56 = vsel %vm559_vm4, %v735_v50, %v768_v54  ;;  %v746_v12 = vrot.slane %v745_v53, 2  ;;  %v741_v57 = vrot.slane %v740_v51, 1 }
 0x3bd   :  { %v752_v58 = vadd.f32 %v751_v55, %v750_v52  ;;  %v747_v59 = vadd.f32 %v746_v12, %v745_v53  ;;  %v742_v62 = vadd.f32 %v741_v57, %v740_v51 }
 0x3bf   :  { %v753_v60 = vrot.slane %v752_v58, 2  ;;  %v748_v61 = vrot.slane %v747_v59, 1  ;;  %v770_v6 = vsel %vm561_vm5, %v742_v62, %v769_v56 }
 0x3c1   :  { %v754_v63 = vadd.f32 %v753_v60, %v752_v58  ;;  %v749_v0 = vadd.f32 %v748_v61, %v747_v59 }
 0x3c3   :  { %v755_v14 = vrot.slane %v754_v63, 1  ;;  %v771_v3 = vsel %vm563_vm6, %v749_v0, %v770_v6 }
 0x3c5   :  { %v756_v2 = vadd.f32 %v755_v14, %v754_v63 }
 0x3c7   :  { %v772_v7 = vsel %vm565_vm7, %v756_v2, %v771_v3 }
 0x3c8   :  { %774 = vst [vmem:[#allocation7] sm:$0xff] %v772_v7 }
 0x3c9   :  { %1033 = shalt.err (!%p1030_p0)
}
 0x3ca   :  { %s1034_s16 = scalar_lea.hbm %s1266_s5, 128 }
 0x3cb   :  { %p1035_p1 = scmp.ne.s32.totalorder %s1266_s5, %s1034_s16  ;;  %p1038_p2 = scmp.lt.u32.totalorder %s1034_s16, %s1266_s5 }
 0x3cd   :  { %p1040_p3 = pnand %p1038_p2, %p1035_p1 }
 0x3cf   :  { %1043 = shalt.err (!%p1040_p3)
}
 0x3d0   :  { %784 = dma.vmem_to_hbm [thread:$0]  %s782_s12, 128, %s1266_s5, [#allocation4]  }
 0x3d1   :  { %1048 = dma.done.wait [#allocation4], 128  }
 0x3d2   :  { %1049 = vsyncadd [#allocation4], 4294967168 }
 0x3d3   :  { %1050 = dma.done.wait [#allocation9], 128  }
 0x3d4   :  { %1051 = vsyncadd [#allocation9], 4294967168 }
 0x3d5   :  { %801 = vsyncpa [#allocation3], 1 }
 0x3d6   :  { %802 = vsyncpa [#allocation6], 1 }
 0x3d7   :  { %803 = vsyncpa [#allocation4], 1 }
 0x3d8   :  { %804 = vsyncpa [#allocation9], 1 }

</bundles_post_ra>
